<compile_context>
chip_gen: v7x
topology: tpu7x:2x2x1
jax: 0.10.0
libtpu: 0.0.40
codegen_flags: <defaults>
</compile_context>

<pallas_src>
import jax
import jax.numpy as jnp
from jax import lax
from jax.experimental import pallas as pl
from jax.experimental.pallas import tpu as pltpu


def _gru_fc_kernel(x_ref, wih_ref, whh_ref, bgx_ref, bhn_ref, wfc_ref, bfc_ref,
                   out_ref, gx_ref):
    # x_ref : (T, Bc, I) time-major input block (one batch chunk)
    # gx_ref: (T, Bc, 3H) f32 VMEM scratch holding the hoisted input projection
    T, Bc, I = x_ref.shape
    H = whh_ref.shape[0]
    cdt = whh_ref.dtype                      # matmul compute dtype (f32 or bf16)

    # ---- hoisted input projection: one (T*Bc, I) @ (I, 3H) MXU op -----------
    x_all = x_ref[...].reshape(T * Bc, I).astype(cdt)
    gx = jnp.dot(x_all, wih_ref[...], preferred_element_type=jnp.float32)
    gx_ref[...] = (gx + bgx_ref[...]).reshape(T, Bc, 3 * H)   # bias pre-merged

    whh = whh_ref[...]                       # hoisted out of the loop
    b_hn = bhn_ref[...]

    # ---- sequential GRU recurrence: one small matmul per step ---------------
    def step(t, h):
        gx_t = gx_ref[t]                                           # (Bc, 3H)
        gh = jnp.dot(h.astype(cdt), whh,
                     preferred_element_type=jnp.float32)           # (Bc, 3H)
        rz = jax.nn.sigmoid(gx_t[:, :2 * H] + gh[:, :2 * H])       # single EUP pass
        r = rz[:, :H]
        z = rz[:, H:]
        n = jnp.tanh(gx_t[:, 2 * H:] + r * (gh[:, 2 * H:] + b_hn))
        return (1.0 - z) * n + z * h

    h0 = jnp.zeros((Bc, H), jnp.float32)
    unroll = True if T <= 16 else 8
    h_last = lax.fori_loop(0, T, step, h0, unroll=unroll)

    # ---- classifier head on the last hidden state ---------------------------
    # TODO(synk): if O grows, zero-pad W_fc/O to a multiple of 128 lanes in the
    # wrapper for lane-dense stores; with O=4 written once it is negligible.
    out_ref[...] = (jnp.dot(h_last.astype(cdt), wfc_ref[...],
                            preferred_element_type=jnp.float32)
                    + bfc_ref[...]).astype(out_ref.dtype)


def rnn_classifier_forward(x, params, *, compute_dtype=jnp.float32,
                           batch_block=None):
    """x: (B, T, I) float32, batch_first like the PyTorch module.

    compute_dtype: dtype used for MXU matmul operands (jnp.bfloat16 on v6e/v7x
                   for throughput; accumulation is always f32).
    batch_block:   batch-chunk size for the "parallel" grid axis (enables
                   megacore sharding on v7x). Must divide B; partial chunks
                   must be a multiple of 8 sublanes. None => single chunk.
    """
    B, T, I = x.shape
    w_ih, w_hh, b_ih, b_hh, w_fc, b_fc = (
        params["w_ih"], params["w_hh"], params["b_ih"],
        params["b_hh"], params["w_fc"], params["b_fc"])
    H = w_hh.shape[1]          # w_hh: (3H, H)
    O = w_fc.shape[0]          # w_fc: (O, H)

    if T == 0:                 # empty sequence: h_T = 0 -> out = b_fc
        return jnp.broadcast_to(b_fc.astype(jnp.float32), (B, O))

    if batch_block is None:
        batch_block = B
    if B % batch_block != 0:
        raise ValueError("batch_block must divide the batch size")
    if batch_block != B and batch_block % 8 != 0:
        raise ValueError("partial batch blocks must be a multiple of 8")
    num_chunks = B // batch_block

    # Time-major so each timestep is a contiguous (Bc, ·) slab in VMEM.
    # TODO(synk): at large T*B*I, pass batch-first and add a second 'arbitrary'
    # grid axis over T-chunks instead of this wrapper transpose (it is one extra
    # HBM read+write of x) and to respect v7x's 64 MiB VMEM budget.
    x_tm = jnp.transpose(x, (1, 0, 2)).astype(jnp.float32)     # (T, B, I)

    cdt = compute_dtype
    wih_t = jnp.transpose(w_ih).astype(cdt)                    # (I, 3H)
    whh_t = jnp.transpose(w_hh).astype(cdt)                    # (H, 3H)
    wfc_t = jnp.transpose(w_fc).astype(cdt)                    # (H, O)

    # Pre-merge biases: r/z input+hidden biases folded into the hoisted input
    # projection; b_hn kept separate (it sits inside r * (...)).
    b_gx = (b_ih + jnp.concatenate([b_hh[:2 * H],
                                    jnp.zeros((H,), b_hh.dtype)])
            ).reshape(1, 3 * H).astype(jnp.float32)
    b_hn = b_hh[2 * H:].reshape(1, H).astype(jnp.float32)
    b_fc2 = b_fc.reshape(1, O).astype(jnp.float32)

    return pl.pallas_call(
        _gru_fc_kernel,
        out_shape=jax.ShapeDtypeStruct((B, O), jnp.float32),
        grid_spec=pltpu.PrefetchScalarGridSpec(
            num_scalar_prefetch=0,
            grid=(num_chunks,),                                   # batch chunks
            in_specs=[
                pl.BlockSpec((T, batch_block, I), lambda b: (0, b, 0)),  # x (time-major)
                pl.BlockSpec((I, 3 * H), lambda b: (0, 0)),              # W_ih^T
                pl.BlockSpec((H, 3 * H), lambda b: (0, 0)),              # W_hh^T
                pl.BlockSpec((1, 3 * H), lambda b: (0, 0)),              # merged input bias
                pl.BlockSpec((1, H), lambda b: (0, 0)),                  # b_hn
                pl.BlockSpec((H, O), lambda b: (0, 0)),                  # W_fc^T
                pl.BlockSpec((1, O), lambda b: (0, 0)),                  # b_fc
            ],
            out_specs=pl.BlockSpec((batch_block, O), lambda b: (b, 0)),
            scratch_shapes=[pltpu.VMEM((T, batch_block, 3 * H), jnp.float32)],
        ),
        compiler_params=pltpu.CompilerParams(
            dimension_semantics=("parallel",)),   # chunks are independent sequences
    )(x_tm, wih_t, whh_t, b_gx, b_hn, wfc_t, b_fc2)


def _reference_forward(x, params):
    """Pure-JAX reference matching torch.nn.GRU (batch_first) + Linear."""
    w_ih, w_hh, b_ih, b_hh, w_fc, b_fc = (
        params["w_ih"], params["w_hh"], params["b_ih"],
        params["b_hh"], params["w_fc"], params["b_fc"])
    H = w_hh.shape[1]
    B = x.shape[0]

    def step(h, x_t):
        gx = x_t @ w_ih.T + b_ih
        gh = h @ w_hh.T + b_hh
        r = jax.nn.sigmoid(gx[:, :H] + gh[:, :H])
        z = jax.nn.sigmoid(gx[:, H:2 * H] + gh[:, H:2 * H])
        n = jnp.tanh(gx[:, 2 * H:] + r * gh[:, 2 * H:])
        h_new = (1.0 - z) * n + z * h
        return h_new, None

    h0 = jnp.zeros((B, H), jnp.float32)
    h_last, _ = lax.scan(step, h0, jnp.transpose(x, (1, 0, 2)))
    return h_last @ w_fc.T + b_fc


def init_params(key, input_size, hidden_size, output_size):
    ks = jax.random.split(key, 6)
    k = 1.0 / jnp.sqrt(hidden_size)
    return {
        "w_ih": jax.random.uniform(ks[0], (3 * hidden_size, input_size),
                                   jnp.float32, -k, k),
        "w_hh": jax.random.uniform(ks[1], (3 * hidden_size, hidden_size),
                                   jnp.float32, -k, k),
        "b_ih": jax.random.uniform(ks[2], (3 * hidden_size,), jnp.float32, -k, k),
        "b_hh": jax.random.uniform(ks[3], (3 * hidden_size,), jnp.float32, -k, k),
        "w_fc": jax.random.uniform(ks[4], (output_size, hidden_size),
                                   jnp.float32, -k, k),
        "b_fc": jax.random.uniform(ks[5], (output_size,), jnp.float32, -k, k),
    }


if __name__ == "__main__":
    # batch, seq_len, input_size, hidden_size, output_size
    B, T, I, H, O = 16, 8, 16, 32, 4

    key = jax.random.PRNGKey(0)
    kx, kp = jax.random.split(key)
    x = jax.random.normal(kx, (B, T, I), dtype=jnp.float32)
    params = init_params(kp, I, H, O)

    ref = jax.block_until_ready(_reference_forward(x, params))

    # f32 path, single batch chunk (exact match to the fp32 reference).
    out = jax.block_until_ready(rnn_classifier_forward(x, params))
    assert out.shape == (B, O)
    assert jnp.allclose(out, ref, atol=1e-4, rtol=1e-4), (out, ref)

    # bf16-MXU path with a 2-way "parallel" batch grid (v6e/v7x scaling path);
    # loose tolerance because matmul operands are rounded to bf16.
    out_bf16 = jax.block_until_ready(
        rnn_classifier_forward(x, params, compute_dtype=jnp.bfloat16,
                               batch_block=8))
    assert out_bf16.shape == (B, O)
    assert jnp.allclose(out_bf16, ref, atol=1e-1, rtol=1e-1), (out_bf16, ref)

    print("KERNEL_OK")
</pallas_src>

<mosaic_0001>
module attributes {stable_mosaic.version = 11 : i64} {
  func.func @_gru_fc_kernel(%arg0: i32, %arg1: memref<8x16x16xf32, #tpu.memory_space<vmem>>, %arg2: memref<16x96xf32, #tpu.memory_space<vmem>>, %arg3: memref<32x96xf32, #tpu.memory_space<vmem>>, %arg4: memref<1x96xf32, #tpu.memory_space<vmem>>, %arg5: memref<1x32xf32, #tpu.memory_space<vmem>>, %arg6: memref<32x4xf32, #tpu.memory_space<vmem>>, %arg7: memref<1x4xf32, #tpu.memory_space<vmem>>, %arg8: memref<16x4xf32, #tpu.memory_space<vmem>>, %arg9: memref<8x16x96xf32, #tpu.memory_space<vmem>>) attributes {dimension_semantics = [#tpu.dimension_semantics<parallel>], iteration_bounds = array<i64: 1>, scalar_prefetch = 0 : i64, scratch_operands = 1 : i64, tpu.core_type = #tpu.core_type<tc>, window_params = [{transform_indices = @transform_0, window_bounds = array<i64: 8, 16, 16>}, {pipeline_mode = #tpu.pipeline_mode<synchronous>, transform_indices = @transform_1, window_bounds = array<i64: 16, 96>}, {pipeline_mode = #tpu.pipeline_mode<synchronous>, transform_indices = @transform_2, window_bounds = array<i64: 32, 96>}, {pipeline_mode = #tpu.pipeline_mode<synchronous>, transform_indices = @transform_3, window_bounds = array<i64: 1, 96>}, {pipeline_mode = #tpu.pipeline_mode<synchronous>, transform_indices = @transform_4, window_bounds = array<i64: 1, 32>}, {pipeline_mode = #tpu.pipeline_mode<synchronous>, transform_indices = @transform_5, window_bounds = array<i64: 32, 4>}, {pipeline_mode = #tpu.pipeline_mode<synchronous>, transform_indices = @transform_6, window_bounds = array<i64: 1, 4>}, {transform_indices = @transform_7, window_bounds = array<i64: 16, 4>}]} {
    %c0 = arith.constant 0 : index
    %c0_0 = arith.constant 0 : index
    %c0_1 = arith.constant 0 : index
    %0 = vector.load %arg1[%c0, %c0_0, %c0_1] : memref<8x16x16xf32, #tpu.memory_space<vmem>>, vector<8x16x16xf32>
    %1 = vector.shape_cast %0 : vector<8x16x16xf32> to vector<128x16xf32>
    %c0_2 = arith.constant 0 : index
    %c0_3 = arith.constant 0 : index
    %2 = vector.load %arg2[%c0_2, %c0_3] : memref<16x96xf32, #tpu.memory_space<vmem>>, vector<16x96xf32>
    %cst = arith.constant dense<0.000000e+00> : vector<128x96xf32>
    %3 = tpu.matmul %1, %2, %cst {dimension_numbers = #tpu.dot_dimension_numbers<[1], [0], [0], [1], [0, 0, 1, 1], [], []>} : vector<128x16xf32>, vector<16x96xf32>, vector<128x96xf32> -> vector<128x96xf32>
    %c0_4 = arith.constant 0 : index
    %c0_5 = arith.constant 0 : index
    %4 = vector.load %arg4[%c0_4, %c0_5] : memref<1x96xf32, #tpu.memory_space<vmem>>, vector<1x96xf32>
    %5 = vector.broadcast %4 : vector<1x96xf32> to vector<128x96xf32>
    %6 = arith.addf %3, %5 : vector<128x96xf32>
    %7 = vector.shape_cast %6 : vector<128x96xf32> to vector<8x16x96xf32>
    %c0_6 = arith.constant 0 : index
    %c0_7 = arith.constant 0 : index
    %c0_8 = arith.constant 0 : index
    %8 = vector.load %arg9[%c0_6, %c0_7, %c0_8] : memref<8x16x96xf32, #tpu.memory_space<vmem>>, vector<8x16x96xf32>
    tpu.vector_store %arg9[%c0_6, %c0_7, %c0_8], %7 {strides = array<i32>} : memref<8x16x96xf32, #tpu.memory_space<vmem>>, vector<8x16x96xf32>,
    %c0_9 = arith.constant 0 : index
    %c0_10 = arith.constant 0 : index
    %9 = vector.load %arg3[%c0_9, %c0_10] : memref<32x96xf32, #tpu.memory_space<vmem>>, vector<32x96xf32>
    %c0_11 = arith.constant 0 : index
    %c0_12 = arith.constant 0 : index
    %10 = vector.load %arg5[%c0_11, %c0_12] : memref<1x32xf32, #tpu.memory_space<vmem>>, vector<1x32xf32>
    %cst_13 = arith.constant 0.000000e+00 : f32
    %11 = vector.broadcast %cst_13 : f32 to vector<16x32xf32>
    %c0_i32 = arith.constant 0 : i32
    %12 = arith.index_cast %c0_i32 : i32 to index
    %c0_14 = arith.constant 0 : index
    %c0_15 = arith.constant 0 : index
    %13 = vector.load %arg9[%12, %c0_14, %c0_15] : memref<8x16x96xf32, #tpu.memory_space<vmem>>, vector<1x16x96xf32>
    %14 = vector.shape_cast %13 : vector<1x16x96xf32> to vector<16x96xf32>
    %cst_16 = arith.constant dense<0.000000e+00> : vector<16x96xf32>
    %15 = tpu.matmul %11, %9, %cst_16 {dimension_numbers = #tpu.dot_dimension_numbers<[1], [0], [0], [1], [0, 0, 1, 1], [], []>} : vector<16x32xf32>, vector<32x96xf32>, vector<16x96xf32> -> vector<16x96xf32>
    %16 = vector.extract_strided_slice %14 {offsets = [0, 0], sizes = [16, 64], strides = [1, 1]} : vector<16x96xf32> to vector<16x64xf32>
    %17 = vector.extract_strided_slice %15 {offsets = [0, 0], sizes = [16, 64], strides = [1, 1]} : vector<16x96xf32> to vector<16x64xf32>
    %18 = arith.addf %16, %17 : vector<16x64xf32>
    %19 = arith.negf %18 : vector<16x64xf32>
    %20 = math.exp %19 : vector<16x64xf32>
    %cst_17 = arith.constant 1.000000e+00 : f32
    %21 = vector.broadcast %cst_17 : f32 to vector<16x64xf32>
    %22 = arith.addf %21, %20 : vector<16x64xf32>
    %23 = arith.divf %21, %22 : vector<16x64xf32>
    %24 = vector.extract_strided_slice %23 {offsets = [0, 0], sizes = [16, 32], strides = [1, 1]} : vector<16x64xf32> to vector<16x32xf32>
    %25 = vector.extract_strided_slice %23 {offsets = [0, 32], sizes = [16, 32], strides = [1, 1]} : vector<16x64xf32> to vector<16x32xf32>
    %26 = vector.extract_strided_slice %14 {offsets = [0, 64], sizes = [16, 32], strides = [1, 1]} : vector<16x96xf32> to vector<16x32xf32>
    %27 = vector.extract_strided_slice %15 {offsets = [0, 64], sizes = [16, 32], strides = [1, 1]} : vector<16x96xf32> to vector<16x32xf32>
    %28 = vector.broadcast %10 : vector<1x32xf32> to vector<16x32xf32>
    %29 = arith.addf %27, %28 : vector<16x32xf32>
    %30 = arith.mulf %24, %29 : vector<16x32xf32>
    %31 = arith.addf %26, %30 : vector<16x32xf32>
    %32 = math.tanh %31 : vector<16x32xf32>
    %cst_18 = arith.constant 1.000000e+00 : f32
    %33 = vector.broadcast %cst_18 : f32 to vector<16x32xf32>
    %34 = arith.subf %33, %25 : vector<16x32xf32>
    %35 = arith.mulf %34, %32 : vector<16x32xf32>
    %36 = arith.mulf %25, %11 : vector<16x32xf32>
    %37 = arith.addf %35, %36 : vector<16x32xf32>
    %c1_i32 = arith.constant 1 : i32
    %38 = arith.index_cast %c1_i32 : i32 to index
    %c0_19 = arith.constant 0 : index
    %c0_20 = arith.constant 0 : index
    %39 = vector.load %arg9[%38, %c0_19, %c0_20] : memref<8x16x96xf32, #tpu.memory_space<vmem>>, vector<1x16x96xf32>
    %40 = vector.shape_cast %39 : vector<1x16x96xf32> to vector<16x96xf32>
    %cst_21 = arith.constant dense<0.000000e+00> : vector<16x96xf32>
    %41 = tpu.matmul %37, %9, %cst_21 {dimension_numbers = #tpu.dot_dimension_numbers<[1], [0], [0], [1], [0, 0, 1, 1], [], []>} : vector<16x32xf32>, vector<32x96xf32>, vector<16x96xf32> -> vector<16x96xf32>
    %42 = vector.extract_strided_slice %40 {offsets = [0, 0], sizes = [16, 64], strides = [1, 1]} : vector<16x96xf32> to vector<16x64xf32>
    %43 = vector.extract_strided_slice %41 {offsets = [0, 0], sizes = [16, 64], strides = [1, 1]} : vector<16x96xf32> to vector<16x64xf32>
    %44 = arith.addf %42, %43 : vector<16x64xf32>
    %45 = arith.negf %44 : vector<16x64xf32>
    %46 = math.exp %45 : vector<16x64xf32>
    %cst_22 = arith.constant 1.000000e+00 : f32
    %47 = vector.broadcast %cst_22 : f32 to vector<16x64xf32>
    %48 = arith.addf %47, %46 : vector<16x64xf32>
    %49 = arith.divf %47, %48 : vector<16x64xf32>
    %50 = vector.extract_strided_slice %49 {offsets = [0, 0], sizes = [16, 32], strides = [1, 1]} : vector<16x64xf32> to vector<16x32xf32>
    %51 = vector.extract_strided_slice %49 {offsets = [0, 32], sizes = [16, 32], strides = [1, 1]} : vector<16x64xf32> to vector<16x32xf32>
    %52 = vector.extract_strided_slice %40 {offsets = [0, 64], sizes = [16, 32], strides = [1, 1]} : vector<16x96xf32> to vector<16x32xf32>
    %53 = vector.extract_strided_slice %41 {offsets = [0, 64], sizes = [16, 32], strides = [1, 1]} : vector<16x96xf32> to vector<16x32xf32>
    %54 = vector.broadcast %10 : vector<1x32xf32> to vector<16x32xf32>
    %55 = arith.addf %53, %54 : vector<16x32xf32>
    %56 = arith.mulf %50, %55 : vector<16x32xf32>
    %57 = arith.addf %52, %56 : vector<16x32xf32>
    %58 = math.tanh %57 : vector<16x32xf32>
    %cst_23 = arith.constant 1.000000e+00 : f32
    %59 = vector.broadcast %cst_23 : f32 to vector<16x32xf32>
    %60 = arith.subf %59, %51 : vector<16x32xf32>
    %61 = arith.mulf %60, %58 : vector<16x32xf32>
    %62 = arith.mulf %51, %37 : vector<16x32xf32>
    %63 = arith.addf %61, %62 : vector<16x32xf32>
    %c2_i32 = arith.constant 2 : i32
    %64 = arith.index_cast %c2_i32 : i32 to index
    %c0_24 = arith.constant 0 : index
    %c0_25 = arith.constant 0 : index
    %65 = vector.load %arg9[%64, %c0_24, %c0_25] : memref<8x16x96xf32, #tpu.memory_space<vmem>>, vector<1x16x96xf32>
    %66 = vector.shape_cast %65 : vector<1x16x96xf32> to vector<16x96xf32>
    %cst_26 = arith.constant dense<0.000000e+00> : vector<16x96xf32>
    %67 = tpu.matmul %63, %9, %cst_26 {dimension_numbers = #tpu.dot_dimension_numbers<[1], [0], [0], [1], [0, 0, 1, 1], [], []>} : vector<16x32xf32>, vector<32x96xf32>, vector<16x96xf32> -> vector<16x96xf32>
    %68 = vector.extract_strided_slice %66 {offsets = [0, 0], sizes = [16, 64], strides = [1, 1]} : vector<16x96xf32> to vector<16x64xf32>
    %69 = vector.extract_strided_slice %67 {offsets = [0, 0], sizes = [16, 64], strides = [1, 1]} : vector<16x96xf32> to vector<16x64xf32>
    %70 = arith.addf %68, %69 : vector<16x64xf32>
    %71 = arith.negf %70 : vector<16x64xf32>
    %72 = math.exp %71 : vector<16x64xf32>
    %cst_27 = arith.constant 1.000000e+00 : f32
    %73 = vector.broadcast %cst_27 : f32 to vector<16x64xf32>
    %74 = arith.addf %73, %72 : vector<16x64xf32>
    %75 = arith.divf %73, %74 : vector<16x64xf32>
    %76 = vector.extract_strided_slice %75 {offsets = [0, 0], sizes = [16, 32], strides = [1, 1]} : vector<16x64xf32> to vector<16x32xf32>
    %77 = vector.extract_strided_slice %75 {offsets = [0, 32], sizes = [16, 32], strides = [1, 1]} : vector<16x64xf32> to vector<16x32xf32>
    %78 = vector.extract_strided_slice %66 {offsets = [0, 64], sizes = [16, 32], strides = [1, 1]} : vector<16x96xf32> to vector<16x32xf32>
    %79 = vector.extract_strided_slice %67 {offsets = [0, 64], sizes = [16, 32], strides = [1, 1]} : vector<16x96xf32> to vector<16x32xf32>
    %80 = vector.broadcast %10 : vector<1x32xf32> to vector<16x32xf32>
    %81 = arith.addf %79, %80 : vector<16x32xf32>
    %82 = arith.mulf %76, %81 : vector<16x32xf32>
    %83 = arith.addf %78, %82 : vector<16x32xf32>
    %84 = math.tanh %83 : vector<16x32xf32>
    %cst_28 = arith.constant 1.000000e+00 : f32
    %85 = vector.broadcast %cst_28 : f32 to vector<16x32xf32>
    %86 = arith.subf %85, %77 : vector<16x32xf32>
    %87 = arith.mulf %86, %84 : vector<16x32xf32>
    %88 = arith.mulf %77, %63 : vector<16x32xf32>
    %89 = arith.addf %87, %88 : vector<16x32xf32>
    %c3_i32 = arith.constant 3 : i32
    %90 = arith.index_cast %c3_i32 : i32 to index
    %c0_29 = arith.constant 0 : index
    %c0_30 = arith.constant 0 : index
    %91 = vector.load %arg9[%90, %c0_29, %c0_30] : memref<8x16x96xf32, #tpu.memory_space<vmem>>, vector<1x16x96xf32>
    %92 = vector.shape_cast %91 : vector<1x16x96xf32> to vector<16x96xf32>
    %cst_31 = arith.constant dense<0.000000e+00> : vector<16x96xf32>
    %93 = tpu.matmul %89, %9, %cst_31 {dimension_numbers = #tpu.dot_dimension_numbers<[1], [0], [0], [1], [0, 0, 1, 1], [], []>} : vector<16x32xf32>, vector<32x96xf32>, vector<16x96xf32> -> vector<16x96xf32>
    %94 = vector.extract_strided_slice %92 {offsets = [0, 0], sizes = [16, 64], strides = [1, 1]} : vector<16x96xf32> to vector<16x64xf32>
    %95 = vector.extract_strided_slice %93 {offsets = [0, 0], sizes = [16, 64], strides = [1, 1]} : vector<16x96xf32> to vector<16x64xf32>
    %96 = arith.addf %94, %95 : vector<16x64xf32>
    %97 = arith.negf %96 : vector<16x64xf32>
    %98 = math.exp %97 : vector<16x64xf32>
    %cst_32 = arith.constant 1.000000e+00 : f32
    %99 = vector.broadcast %cst_32 : f32 to vector<16x64xf32>
    %100 = arith.addf %99, %98 : vector<16x64xf32>
    %101 = arith.divf %99, %100 : vector<16x64xf32>
    %102 = vector.extract_strided_slice %101 {offsets = [0, 0], sizes = [16, 32], strides = [1, 1]} : vector<16x64xf32> to vector<16x32xf32>
    %103 = vector.extract_strided_slice %101 {offsets = [0, 32], sizes = [16, 32], strides = [1, 1]} : vector<16x64xf32> to vector<16x32xf32>
    %104 = vector.extract_strided_slice %92 {offsets = [0, 64], sizes = [16, 32], strides = [1, 1]} : vector<16x96xf32> to vector<16x32xf32>
    %105 = vector.extract_strided_slice %93 {offsets = [0, 64], sizes = [16, 32], strides = [1, 1]} : vector<16x96xf32> to vector<16x32xf32>
    %106 = vector.broadcast %10 : vector<1x32xf32> to vector<16x32xf32>
    %107 = arith.addf %105, %106 : vector<16x32xf32>
    %108 = arith.mulf %102, %107 : vector<16x32xf32>
    %109 = arith.addf %104, %108 : vector<16x32xf32>
    %110 = math.tanh %109 : vector<16x32xf32>
    %cst_33 = arith.constant 1.000000e+00 : f32
    %111 = vector.broadcast %cst_33 : f32 to vector<16x32xf32>
    %112 = arith.subf %111, %103 : vector<16x32xf32>
    %113 = arith.mulf %112, %110 : vector<16x32xf32>
    %114 = arith.mulf %103, %89 : vector<16x32xf32>
    %115 = arith.addf %113, %114 : vector<16x32xf32>
    %c4_i32 = arith.constant 4 : i32
    %116 = arith.index_cast %c4_i32 : i32 to index
    %c0_34 = arith.constant 0 : index
    %c0_35 = arith.constant 0 : index
    %117 = vector.load %arg9[%116, %c0_34, %c0_35] : memref<8x16x96xf32, #tpu.memory_space<vmem>>, vector<1x16x96xf32>
    %118 = vector.shape_cast %117 : vector<1x16x96xf32> to vector<16x96xf32>
    %cst_36 = arith.constant dense<0.000000e+00> : vector<16x96xf32>
    %119 = tpu.matmul %115, %9, %cst_36 {dimension_numbers = #tpu.dot_dimension_numbers<[1], [0], [0], [1], [0, 0, 1, 1], [], []>} : vector<16x32xf32>, vector<32x96xf32>, vector<16x96xf32> -> vector<16x96xf32>
    %120 = vector.extract_strided_slice %118 {offsets = [0, 0], sizes = [16, 64], strides = [1, 1]} : vector<16x96xf32> to vector<16x64xf32>
    %121 = vector.extract_strided_slice %119 {offsets = [0, 0], sizes = [16, 64], strides = [1, 1]} : vector<16x96xf32> to vector<16x64xf32>
    %122 = arith.addf %120, %121 : vector<16x64xf32>
    %123 = arith.negf %122 : vector<16x64xf32>
    %124 = math.exp %123 : vector<16x64xf32>
    %cst_37 = arith.constant 1.000000e+00 : f32
    %125 = vector.broadcast %cst_37 : f32 to vector<16x64xf32>
    %126 = arith.addf %125, %124 : vector<16x64xf32>
    %127 = arith.divf %125, %126 : vector<16x64xf32>
    %128 = vector.extract_strided_slice %127 {offsets = [0, 0], sizes = [16, 32], strides = [1, 1]} : vector<16x64xf32> to vector<16x32xf32>
    %129 = vector.extract_strided_slice %127 {offsets = [0, 32], sizes = [16, 32], strides = [1, 1]} : vector<16x64xf32> to vector<16x32xf32>
    %130 = vector.extract_strided_slice %118 {offsets = [0, 64], sizes = [16, 32], strides = [1, 1]} : vector<16x96xf32> to vector<16x32xf32>
    %131 = vector.extract_strided_slice %119 {offsets = [0, 64], sizes = [16, 32], strides = [1, 1]} : vector<16x96xf32> to vector<16x32xf32>
    %132 = vector.broadcast %10 : vector<1x32xf32> to vector<16x32xf32>
    %133 = arith.addf %131, %132 : vector<16x32xf32>
    %134 = arith.mulf %128, %133 : vector<16x32xf32>
    %135 = arith.addf %130, %134 : vector<16x32xf32>
    %136 = math.tanh %135 : vector<16x32xf32>
    %cst_38 = arith.constant 1.000000e+00 : f32
    %137 = vector.broadcast %cst_38 : f32 to vector<16x32xf32>
    %138 = arith.subf %137, %129 : vector<16x32xf32>
    %139 = arith.mulf %138, %136 : vector<16x32xf32>
    %140 = arith.mulf %129, %115 : vector<16x32xf32>
    %141 = arith.addf %139, %140 : vector<16x32xf32>
    %c5_i32 = arith.constant 5 : i32
    %142 = arith.index_cast %c5_i32 : i32 to index
    %c0_39 = arith.constant 0 : index
    %c0_40 = arith.constant 0 : index
    %143 = vector.load %arg9[%142, %c0_39, %c0_40] : memref<8x16x96xf32, #tpu.memory_space<vmem>>, vector<1x16x96xf32>
    %144 = vector.shape_cast %143 : vector<1x16x96xf32> to vector<16x96xf32>
    %cst_41 = arith.constant dense<0.000000e+00> : vector<16x96xf32>
    %145 = tpu.matmul %141, %9, %cst_41 {dimension_numbers = #tpu.dot_dimension_numbers<[1], [0], [0], [1], [0, 0, 1, 1], [], []>} : vector<16x32xf32>, vector<32x96xf32>, vector<16x96xf32> -> vector<16x96xf32>
    %146 = vector.extract_strided_slice %144 {offsets = [0, 0], sizes = [16, 64], strides = [1, 1]} : vector<16x96xf32> to vector<16x64xf32>
    %147 = vector.extract_strided_slice %145 {offsets = [0, 0], sizes = [16, 64], strides = [1, 1]} : vector<16x96xf32> to vector<16x64xf32>
    %148 = arith.addf %146, %147 : vector<16x64xf32>
    %149 = arith.negf %148 : vector<16x64xf32>
    %150 = math.exp %149 : vector<16x64xf32>
    %cst_42 = arith.constant 1.000000e+00 : f32
    %151 = vector.broadcast %cst_42 : f32 to vector<16x64xf32>
    %152 = arith.addf %151, %150 : vector<16x64xf32>
    %153 = arith.divf %151, %152 : vector<16x64xf32>
    %154 = vector.extract_strided_slice %153 {offsets = [0, 0], sizes = [16, 32], strides = [1, 1]} : vector<16x64xf32> to vector<16x32xf32>
    %155 = vector.extract_strided_slice %153 {offsets = [0, 32], sizes = [16, 32], strides = [1, 1]} : vector<16x64xf32> to vector<16x32xf32>
    %156 = vector.extract_strided_slice %144 {offsets = [0, 64], sizes = [16, 32], strides = [1, 1]} : vector<16x96xf32> to vector<16x32xf32>
    %157 = vector.extract_strided_slice %145 {offsets = [0, 64], sizes = [16, 32], strides = [1, 1]} : vector<16x96xf32> to vector<16x32xf32>
    %158 = vector.broadcast %10 : vector<1x32xf32> to vector<16x32xf32>
    %159 = arith.addf %157, %158 : vector<16x32xf32>
    %160 = arith.mulf %154, %159 : vector<16x32xf32>
    %161 = arith.addf %156, %160 : vector<16x32xf32>
    %162 = math.tanh %161 : vector<16x32xf32>
    %cst_43 = arith.constant 1.000000e+00 : f32
    %163 = vector.broadcast %cst_43 : f32 to vector<16x32xf32>
    %164 = arith.subf %163, %155 : vector<16x32xf32>
    %165 = arith.mulf %164, %162 : vector<16x32xf32>
    %166 = arith.mulf %155, %141 : vector<16x32xf32>
    %167 = arith.addf %165, %166 : vector<16x32xf32>
    %c6_i32 = arith.constant 6 : i32
    %168 = arith.index_cast %c6_i32 : i32 to index
    %c0_44 = arith.constant 0 : index
    %c0_45 = arith.constant 0 : index
    %169 = vector.load %arg9[%168, %c0_44, %c0_45] : memref<8x16x96xf32, #tpu.memory_space<vmem>>, vector<1x16x96xf32>
    %170 = vector.shape_cast %169 : vector<1x16x96xf32> to vector<16x96xf32>
    %cst_46 = arith.constant dense<0.000000e+00> : vector<16x96xf32>
    %171 = tpu.matmul %167, %9, %cst_46 {dimension_numbers = #tpu.dot_dimension_numbers<[1], [0], [0], [1], [0, 0, 1, 1], [], []>} : vector<16x32xf32>, vector<32x96xf32>, vector<16x96xf32> -> vector<16x96xf32>
    %172 = vector.extract_strided_slice %170 {offsets = [0, 0], sizes = [16, 64], strides = [1, 1]} : vector<16x96xf32> to vector<16x64xf32>
    %173 = vector.extract_strided_slice %171 {offsets = [0, 0], sizes = [16, 64], strides = [1, 1]} : vector<16x96xf32> to vector<16x64xf32>
    %174 = arith.addf %172, %173 : vector<16x64xf32>
    %175 = arith.negf %174 : vector<16x64xf32>
    %176 = math.exp %175 : vector<16x64xf32>
    %cst_47 = arith.constant 1.000000e+00 : f32
    %177 = vector.broadcast %cst_47 : f32 to vector<16x64xf32>
    %178 = arith.addf %177, %176 : vector<16x64xf32>
    %179 = arith.divf %177, %178 : vector<16x64xf32>
    %180 = vector.extract_strided_slice %179 {offsets = [0, 0], sizes = [16, 32], strides = [1, 1]} : vector<16x64xf32> to vector<16x32xf32>
    %181 = vector.extract_strided_slice %179 {offsets = [0, 32], sizes = [16, 32], strides = [1, 1]} : vector<16x64xf32> to vector<16x32xf32>
    %182 = vector.extract_strided_slice %170 {offsets = [0, 64], sizes = [16, 32], strides = [1, 1]} : vector<16x96xf32> to vector<16x32xf32>
    %183 = vector.extract_strided_slice %171 {offsets = [0, 64], sizes = [16, 32], strides = [1, 1]} : vector<16x96xf32> to vector<16x32xf32>
    %184 = vector.broadcast %10 : vector<1x32xf32> to vector<16x32xf32>
    %185 = arith.addf %183, %184 : vector<16x32xf32>
    %186 = arith.mulf %180, %185 : vector<16x32xf32>
    %187 = arith.addf %182, %186 : vector<16x32xf32>
    %188 = math.tanh %187 : vector<16x32xf32>
    %cst_48 = arith.constant 1.000000e+00 : f32
    %189 = vector.broadcast %cst_48 : f32 to vector<16x32xf32>
    %190 = arith.subf %189, %181 : vector<16x32xf32>
    %191 = arith.mulf %190, %188 : vector<16x32xf32>
    %192 = arith.mulf %181, %167 : vector<16x32xf32>
    %193 = arith.addf %191, %192 : vector<16x32xf32>
    %c7_i32 = arith.constant 7 : i32
    %194 = arith.index_cast %c7_i32 : i32 to index
    %c0_49 = arith.constant 0 : index
    %c0_50 = arith.constant 0 : index
    %195 = vector.load %arg9[%194, %c0_49, %c0_50] : memref<8x16x96xf32, #tpu.memory_space<vmem>>, vector<1x16x96xf32>
    %196 = vector.shape_cast %195 : vector<1x16x96xf32> to vector<16x96xf32>
    %cst_51 = arith.constant dense<0.000000e+00> : vector<16x96xf32>
    %197 = tpu.matmul %193, %9, %cst_51 {dimension_numbers = #tpu.dot_dimension_numbers<[1], [0], [0], [1], [0, 0, 1, 1], [], []>} : vector<16x32xf32>, vector<32x96xf32>, vector<16x96xf32> -> vector<16x96xf32>
    %198 = vector.extract_strided_slice %196 {offsets = [0, 0], sizes = [16, 64], strides = [1, 1]} : vector<16x96xf32> to vector<16x64xf32>
    %199 = vector.extract_strided_slice %197 {offsets = [0, 0], sizes = [16, 64], strides = [1, 1]} : vector<16x96xf32> to vector<16x64xf32>
    %200 = arith.addf %198, %199 : vector<16x64xf32>
    %201 = arith.negf %200 : vector<16x64xf32>
    %202 = math.exp %201 : vector<16x64xf32>
    %cst_52 = arith.constant 1.000000e+00 : f32
    %203 = vector.broadcast %cst_52 : f32 to vector<16x64xf32>
    %204 = arith.addf %203, %202 : vector<16x64xf32>
    %205 = arith.divf %203, %204 : vector<16x64xf32>
    %206 = vector.extract_strided_slice %205 {offsets = [0, 0], sizes = [16, 32], strides = [1, 1]} : vector<16x64xf32> to vector<16x32xf32>
    %207 = vector.extract_strided_slice %205 {offsets = [0, 32], sizes = [16, 32], strides = [1, 1]} : vector<16x64xf32> to vector<16x32xf32>
    %208 = vector.extract_strided_slice %196 {offsets = [0, 64], sizes = [16, 32], strides = [1, 1]} : vector<16x96xf32> to vector<16x32xf32>
    %209 = vector.extract_strided_slice %197 {offsets = [0, 64], sizes = [16, 32], strides = [1, 1]} : vector<16x96xf32> to vector<16x32xf32>
    %210 = vector.broadcast %10 : vector<1x32xf32> to vector<16x32xf32>
    %211 = arith.addf %209, %210 : vector<16x32xf32>
    %212 = arith.mulf %206, %211 : vector<16x32xf32>
    %213 = arith.addf %208, %212 : vector<16x32xf32>
    %214 = math.tanh %213 : vector<16x32xf32>
    %cst_53 = arith.constant 1.000000e+00 : f32
    %215 = vector.broadcast %cst_53 : f32 to vector<16x32xf32>
    %216 = arith.subf %215, %207 : vector<16x32xf32>
    %217 = arith.mulf %216, %214 : vector<16x32xf32>
    %218 = arith.mulf %207, %193 : vector<16x32xf32>
    %219 = arith.addf %217, %218 : vector<16x32xf32>
    %c8_i32 = arith.constant 8 : i32
    %c0_54 = arith.constant 0 : index
    %c0_55 = arith.constant 0 : index
    %220 = vector.load %arg6[%c0_54, %c0_55] : memref<32x4xf32, #tpu.memory_space<vmem>>, vector<32x4xf32>
    %cst_56 = arith.constant dense<0.000000e+00> : vector<16x4xf32>
    %221 = tpu.matmul %219, %220, %cst_56 {dimension_numbers = #tpu.dot_dimension_numbers<[1], [0], [0], [1], [0, 0, 1, 1], [], []>} : vector<16x32xf32>, vector<32x4xf32>, vector<16x4xf32> -> vector<16x4xf32>
    %c0_57 = arith.constant 0 : index
    %c0_58 = arith.constant 0 : index
    %222 = vector.load %arg7[%c0_57, %c0_58] : memref<1x4xf32, #tpu.memory_space<vmem>>, vector<1x4xf32>
    %223 = vector.broadcast %222 : vector<1x4xf32> to vector<16x4xf32>
    %224 = arith.addf %221, %223 : vector<16x4xf32>
    %c0_59 = arith.constant 0 : index
    %c0_60 = arith.constant 0 : index
    %225 = vector.load %arg8[%c0_59, %c0_60] : memref<16x4xf32, #tpu.memory_space<vmem>>, vector<16x4xf32>
    tpu.vector_store %arg8[%c0_59, %c0_60], %224 {strides = array<i32>} : memref<16x4xf32, #tpu.memory_space<vmem>>, vector<16x4xf32>,
    return
  }
  func.func @transform_0(%arg0: i32) -> (i32, i32, i32) {
    %c0_i32 = arith.constant 0 : i32
    %c0_i32_0 = arith.constant 0 : i32
    %c0_i32_1 = arith.constant 0 : i32
    return %c0_i32, %arg0, %c0_i32_0 : i32, i32, i32
  }
  func.func @transform_1(%arg0: i32) -> (i32, i32) {
    %c0_i32 = arith.constant 0 : i32
    %c0_i32_0 = arith.constant 0 : i32
    %c0_i32_1 = arith.constant 0 : i32
    return %c0_i32, %c0_i32_0 : i32, i32
  }
  func.func @transform_2(%arg0: i32) -> (i32, i32) {
    %c0_i32 = arith.constant 0 : i32
    %c0_i32_0 = arith.constant 0 : i32
    %c0_i32_1 = arith.constant 0 : i32
    return %c0_i32, %c0_i32_0 : i32, i32
  }
  func.func @transform_3(%arg0: i32) -> (i32, i32) {
    %c0_i32 = arith.constant 0 : i32
    %c0_i32_0 = arith.constant 0 : i32
    %c0_i32_1 = arith.constant 0 : i32
    return %c0_i32, %c0_i32_0 : i32, i32
  }
  func.func @transform_4(%arg0: i32) -> (i32, i32) {
    %c0_i32 = arith.constant 0 : i32
    %c0_i32_0 = arith.constant 0 : i32
    %c0_i32_1 = arith.constant 0 : i32
    return %c0_i32, %c0_i32_0 : i32, i32
  }
  func.func @transform_5(%arg0: i32) -> (i32, i32) {
    %c0_i32 = arith.constant 0 : i32
    %c0_i32_0 = arith.constant 0 : i32
    %c0_i32_1 = arith.constant 0 : i32
    return %c0_i32, %c0_i32_0 : i32, i32
  }
  func.func @transform_6(%arg0: i32) -> (i32, i32) {
    %c0_i32 = arith.constant 0 : i32
    %c0_i32_0 = arith.constant 0 : i32
    %c0_i32_1 = arith.constant 0 : i32
    return %c0_i32, %c0_i32_0 : i32, i32
  }
  func.func @transform_7(%arg0: i32) -> (i32, i32) {
    %c0_i32 = arith.constant 0 : i32
    %c0_i32_0 = arith.constant 0 : i32
    return %arg0, %c0_i32 : i32, i32
  }
}

</mosaic_0001>

<bundles_post_ra>
// kernel: tpu_custom_call.1
= control target key start
LH: loop header
LB: loop body
LE: loop exit
PB: predicated region body
PF: predicated region fallthrough
CT: control target
= control target key end

     0   :  { %12 = vsyncpa [#allocation4], 0  ;;  %s2341_s0 = inlined_call_operand.hbm [shape: f32[8,16,16], index: 0, kind: input, shape index: {}]   ;;  %s2342_s1 = inlined_call_operand.hbm [shape: f32[16,96], index: 1, kind: input, shape index: {}]   ;;  %s2343_s2 = inlined_call_operand.vmem [shape: f32[32,96], index: 2, kind: input, shape index: {}]   ;;  %s2344_s3 = inlined_call_operand.vmem [shape: f32[1,96], index: 3, kind: input, shape index: {}]   ;;  %s2345_s4 = inlined_call_operand.vmem [shape: f32[1,32], index: 4, kind: input, shape index: {}]   ;;  %s2346_s5 = inlined_call_operand.vmem [shape: f32[32,4], index: 5, kind: input, shape index: {}]   ;;  %s2347_s6 = inlined_call_operand.vmem [shape: f32[1,4], index: 6, kind: input, shape index: {}]   ;;  %s2348_s7 = inlined_call_operand.vmem [shape: f32[16,4], index: 7, kind: output, shape index: {}]  }
   0x1   :  { %13 = vsyncpa [#allocation6], 0  ;;  %s2014_s24 = smov [#allocation3]   ;;  %s1966_s28 = scalar_lea.hbm %s2341_s0, 2048 }
   0x2   :  { %s19_s25 = sshll.u32 %s2014_s24, 4  ;;  %p1967_p0 = scmp.ne.s32.totalorder %s2341_s0, %s1966_s28  ;;  %s20_s25 = int_to_ptr.vmem [resolvable:$true] %s19_s25 }
   0x3   :  { %p1970_p1 = scmp.lt.u32.totalorder %s1966_s28, %s2341_s0 }
   0x5   :  { %p1972_p2 = pnand %p1970_p1, %p1967_p0 }
   0x7   :  { %1975 = shalt.err (!%p1972_p2)
}
   0x8   :  { %s1976_s10 = scalar_lea.vmem %s20_s25, 2048  ;;  %p1981_p4 = scmp.lt.s32.totalorder %s20_s25, %s20_s25 }
   0x9   :  { %p1977_p3 = scmp.ne.s32.totalorder %s20_s25, %s1976_s10  ;;  %p1982_p5 = scmp.lt.s32.totalorder %s1976_s10, %s1976_s10 }
   0xb   :  { %p1983_p6 = por %p1982_p5, %p1981_p4 }
   0xd   :  { %p1984_p7 = pnand %p1983_p6, %p1977_p3 }
   0xf   :  { %1987 = shalt.err (!%p1984_p7)
}
  0x10   :  { %s2015_s11 = smov 128   ;;  %s2016_s12 = smov 8  }
  0x11   :  { %25 = dma.hbm_to_vmem [thread:$0]  %s2341_s0, 2048, %s20_s25, [#allocation4], %s2015_s11, %s2015_s11, %s2016_s12  }
  0x12   :  { %s2017_s15 = smov [#allocation5]   ;;  %s1988_s19 = scalar_lea.hbm %s2342_s1, 256 }
  0x13   :  { %s31_s16 = sshll.u32 %s2017_s15, 4  ;;  %p1989_p8 = scmp.ne.s32.totalorder %s2342_s1, %s1988_s19  ;;  %s32_s16 = int_to_ptr.vmem [resolvable:$true] %s31_s16 }
  0x14   :  { %p1992_p9 = scmp.lt.u32.totalorder %s1988_s19, %s2342_s1 }
  0x16   :  { %p1994_p10 = pnand %p1992_p9, %p1989_p8 }
  0x18   :  { %1997 = shalt.err (!%p1994_p10)
}
  0x19   :  { %s1998_s24 = scalar_lea.vmem %s32_s16, 256  ;;  %p2003_p12 = scmp.lt.s32.totalorder %s32_s16, %s32_s16 }
  0x1a   :  { %p1999_p11 = scmp.ne.s32.totalorder %s32_s16, %s1998_s24  ;;  %p2004_p13 = scmp.lt.s32.totalorder %s1998_s24, %s1998_s24 }
  0x1c   :  { %p2005_p0 = por %p2004_p13, %p2003_p12 }
  0x1e   :  { %p2006_p1 = pnand %p2005_p0, %p1999_p11 }
  0x20   :  { %2009 = shalt.err (!%p2006_p1)
}
  0x21   :  { %37 = dma.hbm_to_vmem [thread:$0]  %s2342_s1, 256, %s32_s16, [#allocation6], %s2015_s11, %s2015_s11, %s2016_s12  }
  0x22   :  { %2010 = dma.done.wait [#allocation4], 2048  }
  0x23   :  { %2011 = vsyncadd [#allocation4], 4294965248 }
  0x24   :  { %2012 = dma.done.wait [#allocation6], 256  }
  0x25   :  { %2013 = vsyncadd [#allocation6], 4294967040  ;;  %v2018_v0 = vmov 0.0   ;;  %vm79_vm0 = vcmask 130048   ;;  %v70_v1 = vld [vmem:[#allocation5] sm:$0xff]  ;;  %v71_v2 = vld [vmem:[#allocation5 + $0x8] sm:$0xff] }
  0x26   :  { %1696 = vmatprep.mubr.f32.mxu1 %v2018_v0  ;;  %v290_v3 = vld [vmem:[%s2343_s2] sm:$0xff]  ;;  %v1787_v4 = vpack.c.bf16 %v71_v2, %v70_v1  ;;  %v291_v5 = vld [vmem:[%s2343_s2 + $0x8] sm:$0xff]  ;;  %v292_v8 = vld [vmem:[%s2343_s2 + $0x10] sm:$0xff]  ;;  %s2019_s12 = smov 64   ;;  %vm273_vm1 = vcmask 785408   ;;  %vm297_vm2 = vcmask 261120  }
  0x27   :  { %v54_v6 = vld [vmem:[#allocation3] sm:$0xff]  ;;  %v2091_v7 = vpack.c.bf16 %v291_v5, %v290_v3  ;;  %v293_v9 = vld [vmem:[%s2343_s2 + $0x18] sm:$0xff]  ;;  %v55_v12 = vld [vmem:[#allocation3 + $0x8] sm:$0xff]  ;;  %vm1528_vm3 = vcmask 31744  }
  0x28   :  { %1664 = vmatprep.mubr.msk.f32.mxu0 %vm79_vm0, %v54_v6  ;;  %v1556_v10 = vld [vmem:[%s2345_s4] ss:$0 sm:$0xff]  ;;  %1788 = vmatprep.subr.bf16.mxu0 %v1787_v4  ;;  %v2103_v11 = vpack.c.bf16 %v293_v9, %v292_v8  ;;  %v56_v43 = vld [vmem:[#allocation3 + $0x10] sm:$0xff]  ;;  %v57_v44 = vld [vmem:[#allocation3 + $0x18] sm:$0xff] }
  0x29   :  { %395 = vrot.lane.b32.xlu0 %v1556_v10, %s2019_s12  ;;  %1792 = vmatprep.subr.bf16.mxu1 %v2091_v7  ;;  %v2124_v13 = vld [vmem:[%s2344_s3] ss:$0 sm:$0xff]  ;;  %s2020_s3 = smov 96  }
  0x2a   :  { %1790 = vmatpush3.bf16.msra.mxu0 %v1787_v4  ;;  %1794 = vmatpush3.bf16.msra.mxu1 %v2091_v7 }
  0x2b   :  { %1824 = vmatprep.subr.bf16.mxu0 %v2091_v7  ;;  %1796 = vmatprep.subr.bf16.mxu1 %v2103_v11 }
  0x2d   :  { %1665 = vmatmul.mubr.msk.f32.vlgmr.msra.gmra.mrb[0].mxu0 %vm79_vm0, %v55_v12 }
  0x2e   :  { %1826 = vmatpush3.bf16.msra.mxu0 %v2091_v7  ;;  %1798 = vmatpush3.bf16.msra.mxu1 %v2103_v11 }
  0x2f   :  { %1828 = vmatprep.subr.bf16.mxu0 %v2103_v11  ;;  %1800 = vmatprep.subr.bf16.mxu1 %v2091_v7 }
  0x30   :  { %1667 = vmatprep.mubr.msk.f32.mxu0 %vm79_vm0, %v56_v43 }
  0x31   :  { %1697 = vmatmul.mubr.f32.vlgmr.msra.gmra.mrb[0].mxu1 %v2018_v0  ;;  %1668 = vmatmul.mubr.msk.f32.gmra.mrb[2].mxu0 %vm79_vm0, %v57_v44 }
  0x32   :  { %1830 = vmatpush3.bf16.msra.mxu0 %v2103_v11  ;;  %1802 = vmatpush3.bf16.msra.mxu1 %v2091_v7 }
  0x33   :  { %1840 = vmatprep.subr.bf16.mxu0 %v2091_v7  ;;  %1804 = vmatprep.subr.bf16.mxu1 %v2103_v11 }
  0x36   :  { %1806 = vmatpush3.bf16.msra.mxu1 %v2103_v11 }
  0x37   :  { %1808 = vmatprep.subr.bf16.mxu1 %v2091_v7 }
  0x9b   :  { %v2129_v18 = vpop.permute.xlu0 %395 }
 0x100   :  { %v1666_v14 = vpop.f32.mrb[0].mxu0 }
 0x101   :  { %v200_v15 = vadd.f32 %v1666_v14, %v2124_v13  ;;  %v194_v16 = vpop.f32.mrb[1].mxu0 }
 0x102   :  { %v195_v17 = vadd.f32 %v2124_v13, %v194_v16 }
 0x103   :  { %275 = vst.msk [vmem:[#allocation2 + $0x8] sm:$0xff] %vm273_vm1, %v200_v15 }
 0x104   :  { %274 = vst.msk [vmem:[#allocation2] sm:$0xff] %vm273_vm1, %v195_v17  ;;  %v1698_v19 = vpop.f32.mrb[0].mxu1  ;;  %v1669_v57 = vpop.f32.mrb[2].mxu0 }
 0x105   :  { %v367_v20 = vpop.f32.mrb[1].mxu1  ;;  %v399_v21 = vadd.f32 %v1698_v19, %v2129_v18  ;;  %v210_v58 = vadd.f32 %v1669_v57, %v2124_v13  ;;  %v204_v59 = vpop.f32.mrb[3].mxu0 }
 0x106   :  { %v398_v22 = vadd.f32 %v2129_v18, %v367_v20  ;;  %v205_v60 = vadd.f32 %v2124_v13, %v204_v59 }
 0x107   :  { %404 = vrot.lane.b32.xlu1 %v399_v21, %s2019_s12  ;;  %277 = vst.msk [vmem:[#allocation2 + $0x18] sm:$0xff] %vm273_vm1, %v210_v58 }
 0x108   :  { %402 = vrot.lane.b32.xlu0 %v398_v22, %s2019_s12  ;;  %276 = vst.msk [vmem:[#allocation2 + $0x10] sm:$0xff] %vm273_vm1, %v205_v60 }
 0x10a   :  { %v296_v23 = vld [vmem:[#allocation2 + $0x8] sm:$0xff] }
 0x10b   :  { %v295_v24 = vld [vmem:[#allocation2] sm:$0xff]  ;;  %v377_v25 = vadd.f32 %v1698_v19, %v296_v23 }
 0x10c   :  { %v376_v26 = vadd.f32 %v367_v20, %v295_v24 }
 0x10d   :  { %v1555_v27 = vmul.f32 -1.442695, %v377_v25 }
 0x10e   :  { %v1554_v28 = vmul.f32 -1.442695, %v376_v26  ;;  %v440_v3 = vld [vmem:[#allocation2 + $0x18] sm:$0xff] }
 0x10f   :  { %1870 = vpow2.f32 %v1555_v27  ;;  %v439_v4 = vld [vmem:[#allocation2 + $0x10] sm:$0xff]  ;;  %v58_v27 = vld [vmem:[#allocation3 + $0x20] sm:$0xff] }
 0x110   :  { %1872 = vpow2.f32 %v1554_v28  ;;  %v59_v28 = vld [vmem:[#allocation3 + $0x28] sm:$0xff]  ;;  %1670 = vmatprep.mubr.msk.f32.mxu0 %vm79_vm0, %v58_v27 }
 0x111   :  { %1671 = vmatmul.mubr.msk.f32.gmra.mrb[4].mxu0 %vm79_vm0, %v59_v28 }
 0x119   :  { %v1871_v29 = vpop.eup %1870 }
 0x11a   :  { %v1873_v30 = vpop.eup %1872  ;;  %v385_v31 = vadd.f32 1.0, %v1871_v29 }
 0x11b   :  { %v384_v32 = vadd.f32 1.0, %v1873_v30 }
 0x11c   :  { %1874 = vrcp.f32 %v385_v31 }
 0x11d   :  { %1876 = vrcp.f32 %v384_v32 }
 0x126   :  { %v1875_v33 = vpop.eup %1874 }
 0x127   :  { %v1877_v35 = vpop.eup %1876  ;;  %v423_v47 = vsub.f32 1.0, %v1875_v33  ;;  %v435_v50 = vmul.f32 0.0, %v1875_v33 }
 0x128   :  { %v422_v49 = vsub.f32 1.0, %v1877_v35  ;;  %v434_v53 = vmul.f32 0.0, %v1877_v35 }
 0x179   :  { %v405_v34 = vpop.permute.xlu1 %404 }
 0x17a   :  { %v409_v36 = vmul.f32 %v1875_v33, %v405_v34  ;;  %v403_v37 = vpop.permute.xlu0 %402 }
 0x17b   :  { %v408_v38 = vmul.f32 %v1877_v35, %v403_v37 }
 0x17c   :  { %414 = vrot.lane.b32.xlu0 %v409_v36, %s2019_s12 }
 0x17d   :  { %412 = vrot.lane.b32.xlu1 %v408_v38, %s2019_s12 }
 0x1ee   :  { %v415_v39 = vpop.permute.xlu0 %414 }
 0x1ef   :  { %v419_v40 = vadd.f32 %v415_v39, %v296_v23  ;;  %v413_v41 = vpop.permute.xlu1 %412 }
 0x1f0   :  { %v418_v42 = vadd.f32 %v413_v41, %v295_v24  ;;  %v1672_v41 = vpop.f32.mrb[4].mxu0 }
 0x1f1   :  { %1878 = vtanh.f32 %v419_v40  ;;  %v214_v43 = vpop.f32.mrb[5].mxu0 }
 0x1f2   :  { %1880 = vtanh.f32 %v418_v42  ;;  %v220_v42 = vadd.f32 %v1672_v41, %v2124_v13  ;;  %v215_v44 = vadd.f32 %v2124_v13, %v214_v43 }
 0x1f4   :  { %279 = vst.msk [vmem:[#allocation2 + $0x28] sm:$0xff] %vm273_vm1, %v220_v42  ;;  %278 = vst.msk [vmem:[#allocation2 + $0x20] sm:$0xff] %vm273_vm1, %v215_v44 }
 0x1fb   :  { %v1879_v45 = vpop.eup %1878 }
 0x1fc   :  { %v1881_v46 = vpop.eup %1880  ;;  %428 = vrot.lane.b32.xlu0 %v1879_v45, %s2020_s3 }
 0x1fd   :  { %426 = vrot.lane.b32.xlu1 %v1881_v46, %s2020_s3 }
 0x26e   :  { %v429_v48 = vpop.permute.xlu0 %428 }
 0x26f   :  { %v433_v51 = vmul.f32 %v429_v48, %v423_v47  ;;  %v427_v52 = vpop.permute.xlu1 %426 }
 0x270   :  { %v432_v54 = vmul.f32 %v427_v52, %v422_v49  ;;  %v581_v52 = vld [vmem:[#allocation2 + $0x20] sm:$0xff] }
 0x271   :  { %v2142_v55 = vadd.f32 %v435_v50, %v433_v51  ;;  %v582_v51 = vld [vmem:[#allocation2 + $0x28] sm:$0xff] }
 0x272   :  { %v2144_v56 = vadd.f32 %v434_v53, %v432_v54 }
 0x273   :  { %445 = vrot.lane.b32.xlu0 %v2142_v55, %s2020_s3 }
 0x274   :  { %443 = vrot.lane.b32.xlu1 %v2144_v56, %s2020_s3 }
 0x2e5   :  { %v446_v62 = vpop.permute.xlu0 %445 }
 0x2e6   :  { %v444_v61 = vpop.permute.xlu1 %443 }
 0x2e7   :  { %1707 = vmatprep.mubr.msk.f32.mxu1 %vm297_vm2, %v444_v61 }
 0x2e8   :  { %1708 = vmatmul.mubr.msk.f32.vlgmr.msra.gmra.mrb[2].mxu1 %vm297_vm2, %v446_v62 }
 0x2e9   :  { %1810 = vmatpush3.bf16.msra.mxu1 %v2091_v7 }
 0x2ea   :  { %1812 = vmatprep.subr.bf16.mxu1 %v2103_v11 }
 0x2ed   :  { %1814 = vmatpush3.bf16.msra.mxu1 %v2103_v11 }
 0x2ee   :  { %1816 = vmatprep.subr.bf16.mxu1 %v2091_v7 }
 0x3bb   :  { %v1709_v63 = vpop.f32.mrb[2].mxu1 }
 0x3bc   :  { %v541_v0 = vadd.f32 %v1709_v63, %v2129_v18  ;;  %v517_v1 = vpop.f32.mrb[3].mxu1  ;;  %v527_v5 = vadd.f32 %v1709_v63, %v440_v3 }
 0x3bd   :  { %v540_v2 = vadd.f32 %v517_v1, %v2129_v18  ;;  %v526_v6 = vadd.f32 %v517_v1, %v439_v4 }
 0x3be   :  { %546 = vrot.lane.b32.xlu0 %v541_v0, %s2019_s12  ;;  %v1560_v8 = vmul.f32 -1.442695, %v527_v5 }
 0x3bf   :  { %544 = vrot.lane.b32.xlu1 %v540_v2, %s2019_s12  ;;  %v1559_v9 = vmul.f32 -1.442695, %v526_v6 }
 0x3c0   :  { %1882 = vpow2.f32 %v1560_v8  ;;  %v60_v8 = vld [vmem:[#allocation3 + $0x30] sm:$0xff] }
 0x3c1   :  { %1884 = vpow2.f32 %v1559_v9  ;;  %v61_v9 = vld [vmem:[#allocation3 + $0x38] sm:$0xff]  ;;  %1673 = vmatprep.mubr.msk.f32.mxu0 %vm79_vm0, %v60_v8 }
 0x3c2   :  { %1674 = vmatmul.mubr.msk.f32.gmra.mrb[6].mxu0 %vm79_vm0, %v61_v9 }
 0x3ca   :  { %v1883_v10 = vpop.eup %1882 }
 0x3cb   :  { %v1885_v12 = vpop.eup %1884  ;;  %v535_v14 = vadd.f32 1.0, %v1883_v10 }
 0x3cc   :  { %v534_v15 = vadd.f32 1.0, %v1885_v12 }
 0x3cd   :  { %1886 = vrcp.f32 %v535_v14 }
 0x3ce   :  { %1888 = vrcp.f32 %v534_v15 }
 0x3d7   :  { %v1887_v16 = vpop.eup %1886 }
 0x3d8   :  { %v1889_v19 = vpop.eup %1888  ;;  %v565_v31 = vsub.f32 1.0, %v1887_v16  ;;  %v577_v34 = vmul.f32 %v1887_v16, %v2142_v55 }
 0x3d9   :  { %v564_v33 = vsub.f32 1.0, %v1889_v19  ;;  %v576_v37 = vmul.f32 %v1889_v19, %v2144_v56 }
 0x430   :  { %v547_v17 = vpop.permute.xlu0 %546 }
 0x431   :  { %v551_v20 = vmul.f32 %v1887_v16, %v547_v17  ;;  %v545_v21 = vpop.permute.xlu1 %544 }
 0x432   :  { %v550_v22 = vmul.f32 %v1889_v19, %v545_v21 }
 0x433   :  { %556 = vrot.lane.b32.xlu0 %v551_v20, %s2019_s12 }
 0x434   :  { %554 = vrot.lane.b32.xlu1 %v550_v22, %s2019_s12 }
 0x4a5   :  { %v557_v23 = vpop.permute.xlu0 %556 }
 0x4a6   :  { %v561_v24 = vadd.f32 %v557_v23, %v440_v3  ;;  %v555_v25 = vpop.permute.xlu1 %554 }
 0x4a7   :  { %v560_v26 = vadd.f32 %v555_v25, %v439_v4  ;;  %v1675_v25 = vpop.f32.mrb[6].mxu0 }
 0x4a8   :  { %1890 = vtanh.f32 %v561_v24  ;;  %v224_v27 = vpop.f32.mrb[7].mxu0 }
 0x4a9   :  { %1892 = vtanh.f32 %v560_v26  ;;  %v230_v26 = vadd.f32 %v1675_v25, %v2124_v13  ;;  %v225_v28 = vadd.f32 %v2124_v13, %v224_v27 }
 0x4ab   :  { %281 = vst.msk [vmem:[#allocation2 + $0x38] sm:$0xff] %vm273_vm1, %v230_v26  ;;  %280 = vst.msk [vmem:[#allocation2 + $0x30] sm:$0xff] %vm273_vm1, %v225_v28 }
 0x4b2   :  { %v1891_v29 = vpop.eup %1890 }
 0x4b3   :  { %v1893_v30 = vpop.eup %1892  ;;  %570 = vrot.lane.b32.xlu0 %v1891_v29, %s2020_s3 }
 0x4b4   :  { %568 = vrot.lane.b32.xlu1 %v1893_v30, %s2020_s3 }
 0x525   :  { %v571_v32 = vpop.permute.xlu0 %570 }
 0x526   :  { %v575_v35 = vmul.f32 %v571_v32, %v565_v31  ;;  %v569_v36 = vpop.permute.xlu1 %568 }
 0x527   :  { %v574_v38 = vmul.f32 %v569_v36, %v564_v33  ;;  %v723_v36 = vld [vmem:[#allocation2 + $0x30] sm:$0xff] }
 0x528   :  { %v2172_v39 = vadd.f32 %v577_v34, %v575_v35  ;;  %v724_v35 = vld [vmem:[#allocation2 + $0x38] sm:$0xff] }
 0x529   :  { %v2174_v40 = vadd.f32 %v576_v37, %v574_v38 }
 0x52a   :  { %587 = vrot.lane.b32.xlu0 %v2172_v39, %s2020_s3 }
 0x52b   :  { %585 = vrot.lane.b32.xlu1 %v2174_v40, %s2020_s3 }
 0x59c   :  { %v588_v46 = vpop.permute.xlu0 %587 }
 0x59d   :  { %v586_v45 = vpop.permute.xlu1 %585 }
 0x59e   :  { %1718 = vmatprep.mubr.msk.f32.mxu1 %vm297_vm2, %v586_v45 }
 0x59f   :  { %1719 = vmatmul.mubr.msk.f32.vlgmr.msra.gmra.mrb[4].mxu1 %vm297_vm2, %v588_v46 }
 0x5a0   :  { %1818 = vmatpush3.bf16.msra.mxu1 %v2091_v7 }
 0x5a1   :  { %1820 = vmatprep.subr.bf16.mxu1 %v2103_v11 }
 0x5a4   :  { %1822 = vmatpush3.bf16.msra.mxu1 %v2103_v11 }
 0x5a5   :  { %1832 = vmatprep.subr.bf16.mxu1 %v2091_v7 }
 0x672   :  { %v1720_v47 = vpop.f32.mrb[4].mxu1 }
 0x673   :  { %v683_v48 = vadd.f32 %v1720_v47, %v2129_v18  ;;  %v659_v49 = vpop.f32.mrb[5].mxu1  ;;  %v669_v53 = vadd.f32 %v1720_v47, %v582_v51 }
 0x674   :  { %v682_v50 = vadd.f32 %v659_v49, %v2129_v18  ;;  %v668_v54 = vadd.f32 %v659_v49, %v581_v52 }
 0x675   :  { %688 = vrot.lane.b32.xlu0 %v683_v48, %s2019_s12  ;;  %v1564_v55 = vmul.f32 -1.442695, %v669_v53 }
 0x676   :  { %686 = vrot.lane.b32.xlu1 %v682_v50, %s2019_s12  ;;  %v1563_v56 = vmul.f32 -1.442695, %v668_v54 }
 0x677   :  { %1894 = vpow2.f32 %v1564_v55  ;;  %v62_v55 = vld [vmem:[#allocation3 + $0x40] sm:$0xff] }
 0x678   :  { %1896 = vpow2.f32 %v1563_v56  ;;  %v63_v56 = vld [vmem:[#allocation3 + $0x48] sm:$0xff]  ;;  %1676 = vmatprep.mubr.msk.f32.mxu0 %vm79_vm0, %v62_v55 }
 0x679   :  { %1677 = vmatmul.mubr.msk.f32.gmra.mrb[8].mxu0 %vm79_vm0, %v63_v56 }
 0x681   :  { %v1895_v57 = vpop.eup %1894 }
 0x682   :  { %v1897_v58 = vpop.eup %1896  ;;  %v677_v59 = vadd.f32 1.0, %v1895_v57  ;;  %v64_v57 = vld [vmem:[#allocation3 + $0x50] sm:$0xff] }
 0x683   :  { %v676_v60 = vadd.f32 1.0, %v1897_v58  ;;  %1679 = vmatprep.mubr.msk.f32.mxu0 %vm79_vm0, %v64_v57  ;;  %v65_v58 = vld [vmem:[#allocation3 + $0x58] sm:$0xff] }
 0x684   :  { %1898 = vrcp.f32 %v677_v59  ;;  %v66_v59 = vld [vmem:[#allocation3 + $0x60] sm:$0xff]  ;;  %1680 = vmatmul.mubr.msk.f32.gmra.mrb[10].mxu0 %vm79_vm0, %v65_v58 }
 0x685   :  { %1900 = vrcp.f32 %v676_v60  ;;  %1682 = vmatprep.mubr.msk.f32.mxu0 %vm79_vm0, %v66_v59 }
 0x68e   :  { %v1899_v61 = vpop.eup %1898 }
 0x68f   :  { %v1901_v63 = vpop.eup %1900  ;;  %v707_v14 = vsub.f32 1.0, %v1899_v61  ;;  %v719_v17 = vmul.f32 %v1899_v61, %v2172_v39 }
 0x690   :  { %v706_v16 = vsub.f32 1.0, %v1901_v63  ;;  %v718_v21 = vmul.f32 %v1901_v63, %v2174_v40 }
 0x6e7   :  { %v689_v62 = vpop.permute.xlu0 %688 }
 0x6e8   :  { %v693_v0 = vmul.f32 %v1899_v61, %v689_v62  ;;  %v687_v1 = vpop.permute.xlu1 %686  ;;  %v67_v61 = vld [vmem:[#allocation3 + $0x68] sm:$0xff] }
 0x6e9   :  { %v692_v2 = vmul.f32 %v1901_v63, %v687_v1  ;;  %v68_v63 = vld [vmem:[#allocation3 + $0x70] sm:$0xff]  ;;  %1683 = vmatmul.mubr.msk.f32.gmra.mrb[12].mxu0 %vm79_vm0, %v67_v61 }
 0x6ea   :  { %698 = vrot.lane.b32.xlu0 %v693_v0, %s2019_s12  ;;  %1685 = vmatprep.mubr.msk.f32.mxu0 %vm79_vm0, %v68_v63  ;;  %v69_v0 = vld [vmem:[#allocation3 + $0x78] sm:$0xff] }
 0x6eb   :  { %696 = vrot.lane.b32.xlu1 %v692_v2, %s2019_s12 }
 0x6ed   :  { %1686 = vmatmul.mubr.msk.f32.gmra.mrb[14].mxu0 %vm79_vm0, %v69_v0 }
 0x75c   :  { %v699_v3 = vpop.permute.xlu0 %698 }
 0x75d   :  { %v703_v4 = vadd.f32 %v699_v3, %v582_v51  ;;  %v697_v5 = vpop.permute.xlu1 %696 }
 0x75e   :  { %v702_v6 = vadd.f32 %v697_v5, %v581_v52 }
 0x75f   :  { %1902 = vtanh.f32 %v703_v4 }
 0x760   :  { %1904 = vtanh.f32 %v702_v6 }
 0x769   :  { %v1903_v10 = vpop.eup %1902 }
 0x76a   :  { %v1905_v12 = vpop.eup %1904  ;;  %712 = vrot.lane.b32.xlu0 %v1903_v10, %s2020_s3 }
 0x76b   :  { %710 = vrot.lane.b32.xlu1 %v1905_v12, %s2020_s3 }
 0x7dc   :  { %v713_v15 = vpop.permute.xlu0 %712 }
 0x7dd   :  { %v717_v19 = vmul.f32 %v713_v15, %v707_v14  ;;  %v711_v20 = vpop.permute.xlu1 %710  ;;  %v1678_v14 = vpop.f32.mrb[8].mxu0 }
 0x7de   :  { %v716_v22 = vmul.f32 %v711_v20, %v706_v16  ;;  %v240_v15 = vadd.f32 %v1678_v14, %v2124_v13  ;;  %v234_v16 = vpop.f32.mrb[9].mxu0 }
 0x7df   :  { %v2202_v23 = vadd.f32 %v719_v17, %v717_v19  ;;  %v235_v17 = vadd.f32 %v2124_v13, %v234_v16  ;;  %v1681_v19 = vpop.f32.mrb[10].mxu0 }
 0x7e0   :  { %v2204_v24 = vadd.f32 %v718_v21, %v716_v22  ;;  %283 = vst.msk [vmem:[#allocation2 + $0x48] sm:$0xff] %vm273_vm1, %v240_v15  ;;  %v250_v20 = vadd.f32 %v1681_v19, %v2124_v13  ;;  %v244_v21 = vpop.f32.mrb[11].mxu0 }
 0x7e1   :  { %729 = vrot.lane.b32.xlu0 %v2202_v23, %s2020_s3  ;;  %282 = vst.msk [vmem:[#allocation2 + $0x40] sm:$0xff] %vm273_vm1, %v235_v17  ;;  %v245_v22 = vadd.f32 %v2124_v13, %v244_v21 }
 0x7e2   :  { %727 = vrot.lane.b32.xlu1 %v2204_v24, %s2020_s3  ;;  %285 = vst.msk [vmem:[#allocation2 + $0x58] sm:$0xff] %vm273_vm1, %v250_v20 }
 0x7e3   :  { %284 = vst.msk [vmem:[#allocation2 + $0x50] sm:$0xff] %vm273_vm1, %v245_v22 }
 0x7ea   :  { %v1007_v15 = vld [vmem:[#allocation2 + $0x50] sm:$0xff] }
 0x853   :  { %v730_v30 = vpop.permute.xlu0 %729 }
 0x854   :  { %v728_v29 = vpop.permute.xlu1 %727 }
 0x855   :  { %1729 = vmatprep.mubr.msk.f32.mxu1 %vm297_vm2, %v728_v29 }
 0x856   :  { %1730 = vmatmul.mubr.msk.f32.vlgmr.msra.gmra.mrb[6].mxu1 %vm297_vm2, %v730_v30 }
 0x857   :  { %1834 = vmatpush3.bf16.msra.mxu1 %v2091_v7 }
 0x858   :  { %1836 = vmatprep.subr.bf16.mxu1 %v2103_v11 }
 0x85b   :  { %1838 = vmatpush3.bf16.msra.mxu1 %v2103_v11 }
 0x85c   :  { %1848 = vmatprep.subr.bf16.mxu1 %v2091_v7 }
 0x929   :  { %v1731_v31 = vpop.f32.mrb[6].mxu1 }
 0x92a   :  { %v825_v32 = vadd.f32 %v1731_v31, %v2129_v18  ;;  %v801_v33 = vpop.f32.mrb[7].mxu1  ;;  %v811_v37 = vadd.f32 %v1731_v31, %v724_v35 }
 0x92b   :  { %v824_v34 = vadd.f32 %v801_v33, %v2129_v18  ;;  %v810_v38 = vadd.f32 %v801_v33, %v723_v36 }
 0x92c   :  { %830 = vrot.lane.b32.xlu0 %v825_v32, %s2019_s12  ;;  %v1568_v39 = vmul.f32 -1.442695, %v811_v37 }
 0x92d   :  { %828 = vrot.lane.b32.xlu1 %v824_v34, %s2019_s12  ;;  %v1567_v40 = vmul.f32 -1.442695, %v810_v38  ;;  %v865_v38 = vld [vmem:[#allocation2 + $0x40] sm:$0xff] }
 0x92e   :  { %1906 = vpow2.f32 %v1568_v39 }
 0x92f   :  { %1908 = vpow2.f32 %v1567_v40 }
 0x938   :  { %v1907_v41 = vpop.eup %1906 }
 0x939   :  { %v1909_v42 = vpop.eup %1908  ;;  %v819_v43 = vadd.f32 1.0, %v1907_v41 }
 0x93a   :  { %v818_v44 = vadd.f32 1.0, %v1909_v42 }
 0x93b   :  { %1910 = vrcp.f32 %v819_v43 }
 0x93c   :  { %1912 = vrcp.f32 %v818_v44 }
 0x945   :  { %v1911_v45 = vpop.eup %1910 }
 0x946   :  { %v1913_v47 = vpop.eup %1912  ;;  %v849_v1 = vsub.f32 1.0, %v1911_v45  ;;  %v861_v4 = vmul.f32 %v1911_v45, %v2202_v23  ;;  %v1684_v23 = vpop.f32.mrb[12].mxu0 }
 0x947   :  { %v848_v3 = vsub.f32 1.0, %v1913_v47  ;;  %v860_v8 = vmul.f32 %v1913_v47, %v2204_v24  ;;  %v260_v24 = vadd.f32 %v1684_v23, %v2124_v13  ;;  %v254_v25 = vpop.f32.mrb[13].mxu0 }
 0x948   :  { %v255_v26 = vadd.f32 %v2124_v13, %v254_v25  ;;  %v1687_v27 = vpop.f32.mrb[14].mxu0 }
 0x949   :  { %287 = vst.msk [vmem:[#allocation2 + $0x68] sm:$0xff] %vm273_vm1, %v260_v24  ;;  %v270_v28 = vadd.f32 %v1687_v27, %v2124_v13  ;;  %v264_v29 = vpop.f32.mrb[15].mxu0 }
 0x94a   :  { %286 = vst.msk [vmem:[#allocation2 + $0x60] sm:$0xff] %vm273_vm1, %v255_v26  ;;  %v265_v30 = vadd.f32 %v2124_v13, %v264_v29 }
 0x94b   :  { %289 = vst.msk [vmem:[#allocation2 + $0x78] sm:$0xff] %vm273_vm1, %v270_v28 }
 0x94c   :  { %288 = vst.msk [vmem:[#allocation2 + $0x70] sm:$0xff] %vm273_vm1, %v265_v30 }
 0x99e   :  { %v831_v46 = vpop.permute.xlu0 %830 }
 0x99f   :  { %v835_v48 = vmul.f32 %v1911_v45, %v831_v46  ;;  %v829_v49 = vpop.permute.xlu1 %828 }
 0x9a0   :  { %v834_v50 = vmul.f32 %v1913_v47, %v829_v49 }
 0x9a1   :  { %840 = vrot.lane.b32.xlu0 %v835_v48, %s2019_s12 }
 0x9a2   :  { %838 = vrot.lane.b32.xlu1 %v834_v50, %s2019_s12 }
 0xa13   :  { %v841_v51 = vpop.permute.xlu0 %840 }
 0xa14   :  { %v845_v52 = vadd.f32 %v841_v51, %v724_v35  ;;  %v839_v53 = vpop.permute.xlu1 %838 }
 0xa15   :  { %v844_v54 = vadd.f32 %v839_v53, %v723_v36  ;;  %v866_v36 = vld [vmem:[#allocation2 + $0x48] sm:$0xff] }
 0xa16   :  { %1914 = vtanh.f32 %v845_v52 }
 0xa17   :  { %1916 = vtanh.f32 %v844_v54 }
 0xa20   :  { %v1915_v60 = vpop.eup %1914 }
 0xa21   :  { %v1917_v62 = vpop.eup %1916  ;;  %854 = vrot.lane.b32.xlu0 %v1915_v60, %s2020_s3 }
 0xa22   :  { %852 = vrot.lane.b32.xlu1 %v1917_v62, %s2020_s3 }
 0xa93   :  { %v855_v2 = vpop.permute.xlu0 %854 }
 0xa94   :  { %v859_v5 = vmul.f32 %v855_v2, %v849_v1  ;;  %v853_v6 = vpop.permute.xlu1 %852 }
 0xa95   :  { %v858_v9 = vmul.f32 %v853_v6, %v848_v3 }
 0xa96   :  { %v2238_v10 = vadd.f32 %v861_v4, %v859_v5 }
 0xa97   :  { %v2240_v12 = vadd.f32 %v860_v8, %v858_v9 }
 0xa98   :  { %871 = vrot.lane.b32.xlu0 %v2238_v10, %s2020_s3 }
 0xa99   :  { %869 = vrot.lane.b32.xlu1 %v2240_v12, %s2020_s3 }
 0xb0a   :  { %v872_v32 = vpop.permute.xlu0 %871 }
 0xb0b   :  { %v870_v31 = vpop.permute.xlu1 %869 }
 0xb0c   :  { %1740 = vmatprep.mubr.msk.f32.mxu0 %vm297_vm2, %v870_v31 }
 0xb0d   :  { %1741 = vmatmul.mubr.msk.f32.vlgmr.msra.gmra.mrb[16].mxu0 %vm297_vm2, %v872_v32 }
 0xb0e   :  { %1842 = vmatpush3.bf16.msra.mxu0 %v2091_v7 }
 0xb0f   :  { %1844 = vmatprep.subr.bf16.mxu0 %v2103_v11 }
 0xb12   :  { %1846 = vmatpush3.bf16.msra.mxu0 %v2103_v11 }
 0xbe0   :  { %v1742_v33 = vpop.f32.mrb[16].mxu0 }
 0xbe1   :  { %v967_v34 = vadd.f32 %v1742_v33, %v2129_v18  ;;  %v943_v13 = vpop.f32.mrb[17].mxu0  ;;  %v953_v37 = vadd.f32 %v1742_v33, %v866_v36 }
 0xbe2   :  { %v966_v35 = vadd.f32 %v943_v13, %v2129_v18  ;;  %v952_v39 = vadd.f32 %v943_v13, %v865_v38 }
 0xbe3   :  { %972 = vrot.lane.b32.xlu0 %v967_v34, %s2019_s12  ;;  %v1572_v40 = vmul.f32 -1.442695, %v953_v37 }
 0xbe4   :  { %970 = vrot.lane.b32.xlu1 %v966_v35, %s2019_s12  ;;  %v1571_v41 = vmul.f32 -1.442695, %v952_v39 }
 0xbe5   :  { %1918 = vpow2.f32 %v1572_v40 }
 0xbe6   :  { %1920 = vpow2.f32 %v1571_v41 }
 0xbef   :  { %v1919_v42 = vpop.eup %1918 }
 0xbf0   :  { %v1921_v43 = vpop.eup %1920  ;;  %v961_v44 = vadd.f32 1.0, %v1919_v42 }
 0xbf1   :  { %v960_v45 = vadd.f32 1.0, %v1921_v43 }
 0xbf2   :  { %1922 = vrcp.f32 %v961_v44 }
 0xbf3   :  { %1924 = vrcp.f32 %v960_v45 }
 0xbfc   :  { %v1923_v46 = vpop.eup %1922 }
 0xbfd   :  { %v1925_v48 = vpop.eup %1924  ;;  %v991_v58 = vsub.f32 1.0, %v1923_v46  ;;  %v1003_v61 = vmul.f32 %v1923_v46, %v2238_v10 }
 0xbfe   :  { %v990_v60 = vsub.f32 1.0, %v1925_v48  ;;  %v1002_v0 = vmul.f32 %v1925_v48, %v2240_v12  ;;  %v1008_v12 = vld [vmem:[#allocation2 + $0x58] sm:$0xff] }
 0xc55   :  { %v973_v47 = vpop.permute.xlu0 %972 }
 0xc56   :  { %v977_v49 = vmul.f32 %v1923_v46, %v973_v47  ;;  %v971_v50 = vpop.permute.xlu1 %970 }
 0xc57   :  { %v976_v51 = vmul.f32 %v1925_v48, %v971_v50 }
 0xc58   :  { %982 = vrot.lane.b32.xlu0 %v977_v49, %s2019_s12  ;;  %v1150_v49 = vld [vmem:[#allocation2 + $0x68] sm:$0xff] }
 0xc59   :  { %980 = vrot.lane.b32.xlu1 %v976_v51, %s2019_s12  ;;  %v1149_v51 = vld [vmem:[#allocation2 + $0x60] sm:$0xff] }
 0xcca   :  { %v983_v52 = vpop.permute.xlu0 %982 }
 0xccb   :  { %v987_v53 = vadd.f32 %v983_v52, %v866_v36  ;;  %v981_v54 = vpop.permute.xlu1 %980 }
 0xccc   :  { %v986_v55 = vadd.f32 %v981_v54, %v865_v38 }
 0xccd   :  { %1926 = vtanh.f32 %v987_v53 }
 0xcce   :  { %1928 = vtanh.f32 %v986_v55 }
 0xcd7   :  { %v1927_v56 = vpop.eup %1926 }
 0xcd8   :  { %v1929_v57 = vpop.eup %1928  ;;  %996 = vrot.lane.b32.xlu0 %v1927_v56, %s2020_s3 }
 0xcd9   :  { %994 = vrot.lane.b32.xlu1 %v1929_v57, %s2020_s3 }
 0xd4a   :  { %v997_v59 = vpop.permute.xlu0 %996 }
 0xd4b   :  { %v1001_v62 = vmul.f32 %v997_v59, %v991_v58  ;;  %v995_v63 = vpop.permute.xlu1 %994 }
 0xd4c   :  { %v1000_v1 = vmul.f32 %v995_v63, %v990_v60 }
 0xd4d   :  { %v1005_v2 = vadd.f32 %v1003_v61, %v1001_v62 }
 0xd4e   :  { %v1004_v3 = vadd.f32 %v1002_v0, %v1000_v1 }
 0xd4f   :  { %1013 = vrot.lane.b32.xlu0 %v1005_v2, %s2020_s3 }
 0xd50   :  { %1011 = vrot.lane.b32.xlu1 %v1004_v3, %s2020_s3 }
 0xdc1   :  { %v1014_v5 = vpop.permute.xlu0 %1013 }
 0xdc2   :  { %v1012_v4 = vpop.permute.xlu1 %1011 }
 0xdc3   :  { %1751 = vmatprep.mubr.msk.f32.mxu1 %vm297_vm2, %v1012_v4 }
 0xdc4   :  { %1752 = vmatmul.mubr.msk.f32.vlgmr.msra.gmra.mrb[8].mxu1 %vm297_vm2, %v1014_v5 }
 0xdc5   :  { %1850 = vmatpush3.bf16.msra.mxu1 %v2091_v7 }
 0xdc6   :  { %1852 = vmatprep.subr.bf16.mxu1 %v2103_v11 }
 0xdc9   :  { %1854 = vmatpush3.bf16.msra.mxu1 %v2103_v11 }
 0xe97   :  { %v1753_v6 = vpop.f32.mrb[8].mxu1 }
 0xe98   :  { %v1109_v8 = vadd.f32 %v1753_v6, %v2129_v18  ;;  %v1085_v9 = vpop.f32.mrb[9].mxu1  ;;  %v1095_v14 = vadd.f32 %v1753_v6, %v1008_v12 }
 0xe99   :  { %v1108_v10 = vadd.f32 %v1085_v9, %v2129_v18  ;;  %v1094_v16 = vadd.f32 %v1085_v9, %v1007_v15 }
 0xe9a   :  { %1114 = vrot.lane.b32.xlu0 %v1109_v8, %s2019_s12  ;;  %v1576_v17 = vmul.f32 -1.442695, %v1095_v14 }
 0xe9b   :  { %1112 = vrot.lane.b32.xlu1 %v1108_v10, %s2019_s12  ;;  %v1575_v7 = vmul.f32 -1.442695, %v1094_v16 }
 0xe9c   :  { %1930 = vpow2.f32 %v1576_v17 }
 0xe9d   :  { %1932 = vpow2.f32 %v1575_v7 }
 0xea6   :  { %v1931_v19 = vpop.eup %1930 }
 0xea7   :  { %v1933_v11 = vpop.eup %1932  ;;  %v1103_v20 = vadd.f32 1.0, %v1931_v19 }
 0xea8   :  { %v1102_v21 = vadd.f32 1.0, %v1933_v11 }
 0xea9   :  { %1934 = vrcp.f32 %v1103_v20 }
 0xeaa   :  { %1936 = vrcp.f32 %v1102_v21 }
 0xeb3   :  { %v1935_v22 = vpop.eup %1934 }
 0xeb4   :  { %v1937_v24 = vpop.eup %1936  ;;  %v1133_v34 = vsub.f32 1.0, %v1935_v22  ;;  %v1145_v36 = vmul.f32 %v1935_v22, %v1005_v2 }
 0xeb5   :  { %v1132_v35 = vsub.f32 1.0, %v1937_v24  ;;  %v1144_v39 = vmul.f32 %v1937_v24, %v1004_v3 }
 0xf0c   :  { %v1115_v23 = vpop.permute.xlu0 %1114 }
 0xf0d   :  { %v1119_v25 = vmul.f32 %v1935_v22, %v1115_v23  ;;  %v1113_v26 = vpop.permute.xlu1 %1112 }
 0xf0e   :  { %v1118_v27 = vmul.f32 %v1937_v24, %v1113_v26 }
 0xf0f   :  { %1124 = vrot.lane.b32.xlu0 %v1119_v25, %s2019_s12  ;;  %v1292_v25 = vld [vmem:[#allocation2 + $0x78] sm:$0xff] }
 0xf10   :  { %1122 = vrot.lane.b32.xlu1 %v1118_v27, %s2019_s12  ;;  %v1291_v27 = vld [vmem:[#allocation2 + $0x70] sm:$0xff] }
 0xf81   :  { %v1125_v28 = vpop.permute.xlu0 %1124 }
 0xf82   :  { %v1129_v29 = vadd.f32 %v1125_v28, %v1008_v12  ;;  %v1123_v30 = vpop.permute.xlu1 %1122 }
 0xf83   :  { %v1128_v31 = vadd.f32 %v1123_v30, %v1007_v15 }
 0xf84   :  { %1938 = vtanh.f32 %v1129_v29 }
 0xf85   :  { %1940 = vtanh.f32 %v1128_v31 }
 0xf8e   :  { %v1939_v32 = vpop.eup %1938 }
 0xf8f   :  { %v1941_v33 = vpop.eup %1940  ;;  %1138 = vrot.lane.b32.xlu0 %v1939_v32, %s2020_s3 }
 0xf90   :  { %1136 = vrot.lane.b32.xlu1 %v1941_v33, %s2020_s3 }
0x1001   :  { %v1139_v13 = vpop.permute.xlu0 %1138 }
0x1002   :  { %v1143_v37 = vmul.f32 %v1139_v13, %v1133_v34  ;;  %v1137_v38 = vpop.permute.xlu1 %1136 }
0x1003   :  { %v1142_v40 = vmul.f32 %v1137_v38, %v1132_v35 }
0x1004   :  { %v1147_v41 = vadd.f32 %v1145_v36, %v1143_v37 }
0x1005   :  { %v1146_v42 = vadd.f32 %v1144_v39, %v1142_v40 }
0x1006   :  { %1155 = vrot.lane.b32.xlu0 %v1147_v41, %s2020_s3 }
0x1007   :  { %1153 = vrot.lane.b32.xlu1 %v1146_v42, %s2020_s3 }
0x1078   :  { %v1156_v44 = vpop.permute.xlu0 %1155 }
0x1079   :  { %v1154_v43 = vpop.permute.xlu1 %1153 }
0x107a   :  { %1762 = vmatprep.mubr.msk.f32.mxu0 %vm297_vm2, %v1154_v43  ;;  %v1432_v43 = vld [vmem:[%s2346_s5] sm:$0xff] }
0x107b   :  { %1763 = vmatmul.mubr.msk.f32.vlgmr.msra.gmra.mrb[18].mxu0 %vm297_vm2, %v1156_v44  ;;  %v1433_v44 = vld [vmem:[%s2346_s5 + $0x8] sm:$0xff] }
0x114e   :  { %v1764_v45 = vpop.f32.mrb[18].mxu0 }
0x114f   :  { %v1251_v46 = vadd.f32 %v1764_v45, %v2129_v18  ;;  %v1227_v47 = vpop.f32.mrb[19].mxu0  ;;  %v1237_v50 = vadd.f32 %v1764_v45, %v1150_v49  ;;  %v1434_v45 = vld [vmem:[%s2346_s5 + $0x10] sm:$0xff] }
0x1150   :  { %v1250_v48 = vadd.f32 %v1227_v47, %v2129_v18  ;;  %v1236_v52 = vadd.f32 %v1227_v47, %v1149_v51  ;;  %v1435_v47 = vld [vmem:[%s2346_s5 + $0x18] sm:$0xff] }
0x1151   :  { %1256 = vrot.lane.b32.xlu0 %v1251_v46, %s2019_s12  ;;  %v1580_v53 = vmul.f32 -1.442695, %v1237_v50  ;;  %v1855_v46 = vpack.c.bf16 %v1433_v44, %v1432_v43 }
0x1152   :  { %1254 = vrot.lane.b32.xlu1 %v1250_v48, %s2019_s12  ;;  %v1579_v54 = vmul.f32 -1.442695, %v1236_v52  ;;  %v1859_v48 = vpack.c.bf16 %v1435_v47, %v1434_v45 }
0x1153   :  { %1942 = vpow2.f32 %v1580_v53  ;;  %1856 = vmatprep.subr.bf16.mxu0 %v1855_v46 }
0x1154   :  { %1944 = vpow2.f32 %v1579_v54  ;;  %1858 = vmatpush3.bf16.msra.mxu0 %v1855_v46 }
0x1155   :  { %1860 = vmatprep.subr.bf16.mxu0 %v1859_v48 }
0x1158   :  { %1862 = vmatpush3.bf16.msra.mxu0 %v1859_v48 }
0x115d   :  { %v1943_v55 = vpop.eup %1942 }
0x115e   :  { %v1945_v56 = vpop.eup %1944  ;;  %v1245_v57 = vadd.f32 1.0, %v1943_v55 }
0x115f   :  { %v1244_v58 = vadd.f32 1.0, %v1945_v56 }
0x1160   :  { %1946 = vrcp.f32 %v1245_v57 }
0x1161   :  { %1948 = vrcp.f32 %v1244_v58 }
0x116a   :  { %v1947_v59 = vpop.eup %1946 }
0x116b   :  { %v1949_v61 = vpop.eup %1948  ;;  %v1275_v8 = vsub.f32 1.0, %v1947_v59  ;;  %v1287_v12 = vmul.f32 %v1947_v59, %v1147_v41 }
0x116c   :  { %v1274_v10 = vsub.f32 1.0, %v1949_v61  ;;  %v1286_v16 = vmul.f32 %v1949_v61, %v1146_v42 }
0x11c3   :  { %v1257_v60 = vpop.permute.xlu0 %1256 }
0x11c4   :  { %v1261_v62 = vmul.f32 %v1947_v59, %v1257_v60  ;;  %v1255_v63 = vpop.permute.xlu1 %1254 }
0x11c5   :  { %v1260_v0 = vmul.f32 %v1949_v61, %v1255_v63  ;;  %v1585_v63 = vld [vmem:[%s2347_s6] ss:$0 sm:$0xff] }
0x11c6   :  { %1266 = vrot.lane.b32.xlu0 %v1261_v62, %s2019_s12 }
0x11c7   :  { %1264 = vrot.lane.b32.xlu1 %v1260_v0, %s2019_s12 }
0x1238   :  { %v1267_v1 = vpop.permute.xlu0 %1266 }
0x1239   :  { %v1271_v2 = vadd.f32 %v1267_v1, %v1150_v49  ;;  %v1265_v3 = vpop.permute.xlu1 %1264 }
0x123a   :  { %v1270_v4 = vadd.f32 %v1265_v3, %v1149_v51 }
0x123b   :  { %1950 = vtanh.f32 %v1271_v2 }
0x123c   :  { %1952 = vtanh.f32 %v1270_v4 }
0x1245   :  { %v1951_v5 = vpop.eup %1950 }
0x1246   :  { %v1953_v6 = vpop.eup %1952  ;;  %1280 = vrot.lane.b32.xlu0 %v1951_v5, %s2020_s3 }
0x1247   :  { %1278 = vrot.lane.b32.xlu1 %v1953_v6, %s2020_s3 }
0x12b8   :  { %v1281_v9 = vpop.permute.xlu0 %1280 }
0x12b9   :  { %v1285_v14 = vmul.f32 %v1281_v9, %v1275_v8  ;;  %v1279_v15 = vpop.permute.xlu1 %1278 }
0x12ba   :  { %v1284_v17 = vmul.f32 %v1279_v15, %v1274_v10 }
0x12bb   :  { %v1289_v7 = vadd.f32 %v1287_v12, %v1285_v14 }
0x12bc   :  { %v1288_v19 = vadd.f32 %v1286_v16, %v1284_v17 }
0x12bd   :  { %1297 = vrot.lane.b32.xlu0 %v1289_v7, %s2020_s3 }
0x12be   :  { %1295 = vrot.lane.b32.xlu1 %v1288_v19, %s2020_s3 }
0x132f   :  { %v1298_v20 = vpop.permute.xlu0 %1297 }
0x1330   :  { %v1296_v11 = vpop.permute.xlu1 %1295 }
0x1331   :  { %1773 = vmatprep.mubr.msk.f32.mxu1 %vm297_vm2, %v1296_v11 }
0x1332   :  { %1774 = vmatmul.mubr.msk.f32.vlgmr.msra.gmra.mrb[10].mxu1 %vm297_vm2, %v1298_v20 }
0x1405   :  { %v1775_v21 = vpop.f32.mrb[10].mxu1 }
0x1406   :  { %v1393_v22 = vadd.f32 %v1775_v21, %v2129_v18  ;;  %v1369_v23 = vpop.f32.mrb[11].mxu1  ;;  %v1379_v26 = vadd.f32 %v1775_v21, %v1292_v25 }
0x1407   :  { %v1392_v24 = vadd.f32 %v1369_v23, %v2129_v18  ;;  %v1378_v28 = vadd.f32 %v1369_v23, %v1291_v27 }
0x1408   :  { %1398 = vrot.lane.b32.xlu0 %v1393_v22, %s2019_s12  ;;  %v1584_v29 = vmul.f32 -1.442695, %v1379_v26 }
0x1409   :  { %1396 = vrot.lane.b32.xlu1 %v1392_v24, %s2019_s12  ;;  %v1583_v30 = vmul.f32 -1.442695, %v1378_v28 }
0x140a   :  { %1954 = vpow2.f32 %v1584_v29 }
0x140b   :  { %1956 = vpow2.f32 %v1583_v30 }
0x1414   :  { %v1955_v31 = vpop.eup %1954 }
0x1415   :  { %v1957_v32 = vpop.eup %1956  ;;  %v1387_v33 = vadd.f32 1.0, %v1955_v31 }
0x1416   :  { %v1386_v34 = vadd.f32 1.0, %v1957_v32 }
0x1417   :  { %1958 = vrcp.f32 %v1387_v33 }
0x1418   :  { %1960 = vrcp.f32 %v1386_v34 }
0x1421   :  { %v1959_v13 = vpop.eup %1958 }
0x1422   :  { %v1961_v35 = vpop.eup %1960  ;;  %v1417_v51 = vsub.f32 1.0, %v1959_v13  ;;  %v1429_v54 = vmul.f32 %v1959_v13, %v1289_v7 }
0x1423   :  { %v1416_v53 = vsub.f32 1.0, %v1961_v35  ;;  %v1428_v57 = vmul.f32 %v1961_v35, %v1288_v19 }
0x147a   :  { %v1399_v18 = vpop.permute.xlu0 %1398 }
0x147b   :  { %v1403_v36 = vmul.f32 %v1959_v13, %v1399_v18  ;;  %v1397_v37 = vpop.permute.xlu1 %1396 }
0x147c   :  { %v1402_v38 = vmul.f32 %v1961_v35, %v1397_v37 }
0x147d   :  { %1408 = vrot.lane.b32.xlu0 %v1403_v36, %s2019_s12 }
0x147e   :  { %1406 = vrot.lane.b32.xlu1 %v1402_v38, %s2019_s12 }
0x14ef   :  { %v1409_v39 = vpop.permute.xlu0 %1408 }
0x14f0   :  { %v1413_v40 = vadd.f32 %v1409_v39, %v1292_v25  ;;  %v1407_v41 = vpop.permute.xlu1 %1406 }
0x14f1   :  { %v1412_v42 = vadd.f32 %v1407_v41, %v1291_v27 }
0x14f2   :  { %1962 = vtanh.f32 %v1413_v40 }
0x14f3   :  { %1964 = vtanh.f32 %v1412_v42 }
0x14fc   :  { %v1963_v49 = vpop.eup %1962 }
0x14fd   :  { %v1965_v50 = vpop.eup %1964  ;;  %1422 = vrot.lane.b32.xlu0 %v1963_v49, %s2020_s3 }
0x14fe   :  { %1420 = vrot.lane.b32.xlu1 %v1965_v50, %s2020_s3 }
0x156f   :  { %v1423_v52 = vpop.permute.xlu0 %1422 }
0x1570   :  { %v1427_v55 = vmul.f32 %v1423_v52, %v1417_v51  ;;  %v1421_v56 = vpop.permute.xlu1 %1420 }
0x1571   :  { %v1426_v58 = vmul.f32 %v1421_v56, %v1416_v53 }
0x1572   :  { %v1431_v59 = vadd.f32 %v1429_v54, %v1427_v55 }
0x1573   :  { %v1430_v60 = vadd.f32 %v1428_v57, %v1426_v58 }
0x1574   :  { %1447 = vrot.lane.b32.xlu0 %v1431_v59, %s2020_s3 }
0x1575   :  { %1445 = vrot.lane.b32.xlu1 %v1430_v60, %s2020_s3 }
0x15e6   :  { %v1448_v62 = vpop.permute.xlu0 %1447 }
0x15e7   :  { %v1446_v61 = vpop.permute.xlu1 %1445 }
0x15e8   :  { %1784 = vmatprep.mubr.msk.f32.mxu0 %vm297_vm2, %v1446_v61 }
0x15e9   :  { %1785 = vmatmul.mubr.msk.f32.vlgmr.msra.gmra.mrb[20].mxu0 %vm297_vm2, %v1448_v62 }
0x16bc   :  { %v1786_v0 = vpop.f32.mrb[20].mxu0 }
0x16bd   :  { %v1525_v1 = vadd.f32 %v1786_v0, %v1585_v63  ;;  %v1519_v2 = vpop.f32.mrb[21].mxu0 }
0x16be   :  { %v1520_v3 = vadd.f32 %v1585_v63, %v1519_v2 }
0x16bf   :  { %1530 = vst.msk [vmem:[%s2348_s7 + $0x8] sm:$0xff] %vm1528_vm3, %v1525_v1 }
0x16c0   :  { %1529 = vst.msk [vmem:[%s2348_s7] sm:$0xff] %vm1528_vm3, %v1520_v3 }
0x16c1   :  { %1535 = vsyncpa [#allocation4], 1 }
0x16c2   :  { %1536 = vsyncpa [#allocation6], 1 }

</bundles_post_ra>
